<compile_context>
chip_gen: v7x
topology: tpu7x:2x2x1
jax: 0.10.0
libtpu: 0.0.40
codegen_flags: <defaults>
</compile_context>

<pallas_src>
import functools
import re

import jax
import jax.numpy as jnp
from jax import lax
from jax.experimental import pallas as pl
from jax.experimental.pallas import tpu as pltpu


# ----------------------------------------------------------------------------
# Hardware-generation helpers (best-effort; safe fallbacks everywhere).
# ----------------------------------------------------------------------------
def _tpu_generation():
    try:
        kind = jax.devices()[0].device_kind
    except Exception:
        return 0
    m = re.search(r"(\d+)", kind)
    return int(m.group(1)) if m else 0


def _vmem_limit_bytes(gen):
    cap = None
    try:
        cap = int(getattr(pltpu.get_tpu_info(), "vmem_capacity_bytes", 0)) or None
    except Exception:
        cap = None
    if cap is None:
        cap = (64 if gen >= 7 else 128) * 1024 * 1024
    if gen >= 7:
        limit = int(cap * 0.6)          # ~38 MiB of v7x's 64 MiB physical VMEM
    else:
        limit = min(48 * 1024 * 1024, int(cap * 0.6))
    return max(limit, 32 * 1024 * 1024)


def _pick_query_tile(n, gen):
    # v7x has half the VMEM (64 MiB): keep the (tq, N) score block smaller there.
    candidates = (256, 128) if gen >= 7 else (512, 256, 128)
    for t in candidates:
        if n % t == 0:
            return t
    return n


# ----------------------------------------------------------------------------
# Kernel
# ----------------------------------------------------------------------------
def attention_kernel(x_ref, k_ref, v_ref, wq_ref, wout_ref, bout_ref, o_ref,
                     acc_ref, *, heads, dim_head, compute_dtype):
    # x_ref   : (1, C, tq)      query tile of activations, channel-major (pixels on lanes)
    # k_ref   : (1, hidden, N)  pre-projected keys for this batch element
    # v_ref   : (1, hidden, N)  pre-projected values for this batch element
    # wq_ref  : (hidden, C)     q 1x1-conv weight, pre-scaled by dim_head**-0.5
    # wout_ref: (C, hidden)     to_out 1x1-conv weight
    # bout_ref: (C, 1)          to_out bias (column vector -> broadcasts over lanes)
    # o_ref   : (1, C, tq)      output query tile, channel-major
    # acc_ref : (hidden, tq)    f32 VMEM scratch holding the merged head outputs
    n_keys = k_ref.shape[2]
    x_q = x_ref[0]                                        # (C, tq) f32

    # Hoisted out of the head loop (JAX does not CSE broadcasts).
    ones_row = jnp.ones((1, n_keys), dtype=jnp.float32)

    def head_body(h, carry):
        row = pl.multiple_of(h * dim_head, dim_head)      # sublane-aligned head slice

        # Per-head q projection: (dh, C) @ (C, tq) -> (dh, tq); scale pre-folded.
        q = jnp.dot(wq_ref[pl.ds(row, dim_head), :], x_q,
                    preferred_element_type=jnp.float32)
        k = k_ref[0, pl.ds(row, dim_head), :]             # (dh, N)
        v = v_ref[0, pl.ds(row, dim_head), :]             # (dh, N)

        # sim[i, j] = sum_d q[d, i] * k[d, j]  (contract dh of both; no k.T)
        sim = lax.dot_general(q, k, (((0,), (0,)), ((), ())),
                              preferred_element_type=jnp.float32)    # (tq, N)
        sim = sim - jnp.max(sim, axis=-1, keepdims=True)
        # bf16 exp on v6e/v7x (doubles EUP throughput); f32 on v5e.
        p = jnp.exp(sim.astype(compute_dtype))                       # (tq, N)

        # Fused attn.v + denominator: append a row of ones to v (concat in f32,
        # 8-row aligned, then cast) so the single MXU contraction also yields
        # the softmax denominator already in lane-major (1, tq) form.
        v_ext = jnp.concatenate([v, ones_row], axis=0).astype(compute_dtype)  # (dh+1, N)
        acc = lax.dot_general(v_ext, p, (((1,), (1,)), ((), ())),
                              preferred_element_type=jnp.float32)    # (dh+1, tq)

        # Post-matmul normalization: (dh, tq) scale instead of a (tq, N) one.
        inv = pl.reciprocal(acc[dim_head:dim_head + 1, :], approx=True)  # (1, tq)
        acc_ref[pl.ds(row, dim_head), :] = acc[0:dim_head, :] * inv
        return carry

    lax.fori_loop(0, heads, head_body, 0)

    # to_out 1x1 conv with bias, still channel-major.
    y = jnp.dot(wout_ref[...], acc_ref[...],
                preferred_element_type=jnp.float32) + bout_ref[...]  # (C, tq)
    o_ref[0] = y.astype(o_ref.dtype)


# ----------------------------------------------------------------------------
# Parameter preparation (done ONCE, outside the forward): 2-D 1x1-conv weights,
# softmax scale folded into the q rows, bias as a column vector.
# ----------------------------------------------------------------------------
def prepare_attention_params(w_qkv, w_out, b_out, *, heads, dim_head):
    hidden = heads * dim_head
    scale = float(dim_head) ** (-0.5)
    w = w_qkv.reshape(3 * hidden, -1)                 # (3*hidden, C)
    wq = w[:hidden] * scale                           # fold softmax scale into q rows
    wk = w[hidden:2 * hidden]
    wv = w[2 * hidden:]
    wout = w_out.reshape(w_out.shape[0], hidden)      # (C, hidden)
    bout = b_out.reshape(-1, 1)                       # (C, 1)
    return wq, wk, wv, wout, bout


def _attention_xla(x, wq, wk, wv, wout, bout, heads, dim_head):
    """Plain-XLA path for feature maps whose pixel count is not lane-aligned."""
    B, C, N = x.shape
    hidden = heads * dim_head
    q = jnp.einsum('oc,bcn->bon', wq, x).reshape(B, heads, dim_head, N)
    k = jnp.einsum('oc,bcn->bon', wk, x).reshape(B, heads, dim_head, N)
    v = jnp.einsum('oc,bcn->bon', wv, x).reshape(B, heads, dim_head, N)
    sim = jnp.einsum('bhdi,bhdj->bhij', q, k)
    attn = jax.nn.softmax(sim, axis=-1)
    out = jnp.einsum('bhij,bhdj->bhdi', attn, v).reshape(B, hidden, N)
    return jnp.einsum('oc,bcn->bon', wout, out) + bout.reshape(1, -1, 1)


# ----------------------------------------------------------------------------
# Forward wrapper
# ----------------------------------------------------------------------------
def attention_forward(x_nchw, params, *, heads, dim_head):
    """x_nchw: (B, C, H, W); params from prepare_attention_params."""
    wq, wk, wv, wout, bout = params
    B, C, H, W = x_nchw.shape
    N = H * W
    hidden = heads * dim_head

    # NCHW -> channel-major (B, C, N): pure reshape, no transpose.
    x = x_nchw.reshape(B, C, N)

    if N % 128 != 0:
        # TODO(synk): pad the pixel axis with -inf-masked keys instead of an
        # XLA fallback for non-lane-aligned (e.g. 7x7/8x8) feature maps.
        return _attention_xla(x, wq, wk, wv, wout, bout,
                              heads, dim_head).reshape(B, C, H, W)

    gen = _tpu_generation()
    tq = _pick_query_tile(N, gen)
    compute_dtype = jnp.bfloat16 if gen >= 6 else jnp.float32  # v5e: no bf16 VPU/EUP

    # K/V 1x1-conv projections hoisted out of the kernel: computed once per
    # batch element by XLA instead of once per query tile in the kernel.
    k = jnp.einsum('oc,bcn->bon', wk, x)        # (B, hidden, N)
    v = jnp.einsum('oc,bcn->bon', wv, x)        # (B, hidden, N)

    grid = (B, N // tq)
    kernel = functools.partial(attention_kernel, heads=heads, dim_head=dim_head,
                               compute_dtype=compute_dtype)

    flops = int(B * (2 * hidden * C * N                       # q projection
                     + 2 * heads * dim_head * N * N           # q.k
                     + 2 * heads * (dim_head + 1) * N * N     # attn.v (+denom row)
                     + 2 * C * hidden * N))                   # to_out
    cost = pl.CostEstimate(flops=flops,
                           transcendentals=int(B * heads * N * N),
                           bytes_accessed=int(4 * B * N * (2 * C + 2 * hidden)))

    out = pl.pallas_call(
        kernel,
        out_shape=jax.ShapeDtypeStruct((B, C, N), x.dtype),
        grid_spec=pltpu.PrefetchScalarGridSpec(
            num_scalar_prefetch=0,
            grid=grid,
            in_specs=[
                pl.BlockSpec((1, C, tq), lambda b, q: (b, 0, q)),      # x query tile
                pl.BlockSpec((1, hidden, N), lambda b, q: (b, 0, 0)),  # K (fetched once per batch)
                pl.BlockSpec((1, hidden, N), lambda b, q: (b, 0, 0)),  # V (fetched once per batch)
                pl.BlockSpec((hidden, C), lambda b, q: (0, 0)),        # q weight (pre-scaled)
                pl.BlockSpec((C, hidden), lambda b, q: (0, 0)),        # to_out weight
                pl.BlockSpec((C, 1), lambda b, q: (0, 0)),             # to_out bias
            ],
            out_specs=pl.BlockSpec((1, C, tq), lambda b, q: (b, 0, q)),
            scratch_shapes=[pltpu.VMEM((hidden, tq), jnp.float32)],
        ),
        compiler_params=pltpu.CompilerParams(
            dimension_semantics=("parallel", "parallel"),
            vmem_limit_bytes=_vmem_limit_bytes(gen),
        ),
        cost_estimate=cost,
    )(x, k, v, wq, wout, bout)

    # channel-major (B, C, N) -> NCHW: pure reshape.
    return out.reshape(B, C, H, W)


# ----------------------------------------------------------------------------
# Pure-JAX reference mirroring the PyTorch module (for sanity checking).
# ----------------------------------------------------------------------------
def reference_forward(x_nchw, w_qkv, w_out, b_out, *, heads, dim_head):
    B, C, H, W = x_nchw.shape
    N = H * W
    hidden = heads * dim_head
    scale = float(dim_head) ** (-0.5)
    x = x_nchw.reshape(B, C, N)                                       # (B, C, N)
    qkv = jnp.einsum('oc,bcn->bon', w_qkv.reshape(3 * hidden, C), x)  # (B, 3*hidden, N)
    q, k, v = jnp.split(qkv, 3, axis=1)
    def split_heads(t):  # (B, hidden, N) -> (B, heads, dh, N)
        return t.reshape(B, heads, dim_head, N)
    q, k, v = map(split_heads, (q, k, v))
    q = q * scale
    sim = jnp.einsum('bhdi,bhdj->bhij', q, k)
    attn = jax.nn.softmax(sim, axis=-1)
    out = jnp.einsum('bhij,bhdj->bhid', attn, v)                      # (B, heads, N, dh)
    out = jnp.transpose(out, (0, 1, 3, 2)).reshape(B, hidden, H, W)   # b (h d) x y
    y = jnp.einsum('oc,bchw->bohw', w_out.reshape(C, hidden), out) + b_out.reshape(1, C, 1, 1)
    return y


if __name__ == "__main__":
    dim, heads, dim_head = 4, 2, 8
    hidden = heads * dim_head
    B, H, W = 2, 16, 16

    key = jax.random.PRNGKey(0)
    kx, kq, kw, kb = jax.random.split(key, 4)
    x = jax.random.normal(kx, (B, dim, H, W), dtype=jnp.float32)
    w_qkv = jax.random.normal(kq, (3 * hidden, dim, 1, 1), dtype=jnp.float32) * 0.1
    w_out = jax.random.normal(kw, (dim, hidden, 1, 1), dtype=jnp.float32) * 0.1
    b_out = jax.random.normal(kb, (dim,), dtype=jnp.float32) * 0.1

    # Parameter prep (scale folding, 2-D weights) happens once, outside the forward.
    params = prepare_attention_params(w_qkv, w_out, b_out, heads=heads, dim_head=dim_head)

    y = attention_forward(x, params, heads=heads, dim_head=dim_head)
    y = jax.block_until_ready(y)

    y_ref = reference_forward(x, w_qkv, w_out, b_out, heads=heads, dim_head=dim_head)
    assert y.shape == (B, dim, H, W)
    # bf16 exp/attn.v on v6e+ and the approx reciprocal give small numeric deltas.
    tol = 3e-2 if _tpu_generation() >= 6 else 5e-3
    assert jnp.allclose(y, y_ref, atol=tol, rtol=tol), "mismatch vs reference"

    print("KERNEL_OK")
</pallas_src>

<mosaic_0001>
module attributes {stable_mosaic.version = 11 : i64} {
  func.func @attention_kernel(%arg0: i32, %arg1: i32, %arg2: memref<1x4x256xf32, #tpu.memory_space<vmem>>, %arg3: memref<1x16x256xf32, #tpu.memory_space<vmem>>, %arg4: memref<1x16x256xf32, #tpu.memory_space<vmem>>, %arg5: memref<16x4xf32, #tpu.memory_space<vmem>>, %arg6: memref<4x16xf32, #tpu.memory_space<vmem>>, %arg7: memref<4x1xf32, #tpu.memory_space<vmem>>, %arg8: memref<1x4x256xf32, #tpu.memory_space<vmem>>, %arg9: memref<16x256xf32, #tpu.memory_space<vmem>>) attributes {dimension_semantics = [#tpu.dimension_semantics<parallel>, #tpu.dimension_semantics<parallel>], iteration_bounds = array<i64: 2, 1>, scalar_prefetch = 0 : i64, scratch_operands = 1 : i64, tpu.core_type = #tpu.core_type<tc>, window_params = [{transform_indices = @transform_0, window_bounds = array<i64: 1, 4, 256>}, {transform_indices = @transform_1, window_bounds = array<i64: 1, 16, 256>}, {transform_indices = @transform_2, window_bounds = array<i64: 1, 16, 256>}, {pipeline_mode = #tpu.pipeline_mode<synchronous>, transform_indices = @transform_3, window_bounds = array<i64: 16, 4>}, {pipeline_mode = #tpu.pipeline_mode<synchronous>, transform_indices = @transform_4, window_bounds = array<i64: 4, 16>}, {pipeline_mode = #tpu.pipeline_mode<synchronous>, transform_indices = @transform_5, window_bounds = array<i64: 4, 1>}, {transform_indices = @transform_6, window_bounds = array<i64: 1, 4, 256>}]} {
    %c0 = arith.constant 0 : index
    %c0_0 = arith.constant 0 : index
    %c0_1 = arith.constant 0 : index
    %0 = vector.load %arg2[%c0, %c0_0, %c0_1] : memref<1x4x256xf32, #tpu.memory_space<vmem>>, vector<1x4x256xf32>
    %1 = vector.shape_cast %0 : vector<1x4x256xf32> to vector<4x256xf32>
    %cst = arith.constant 1.000000e+00 : f32
    %2 = vector.broadcast %cst : f32 to vector<1x256xf32>
    %c0_i32 = arith.constant 0 : i32
    %c2_i32 = arith.constant 2 : i32
    %3 = arith.addi %c0_i32, %c2_i32 : i32
    %c1_i32 = arith.constant 1 : i32
    scf.for %arg10 = %c0_i32 to %3 step %c1_i32  : i32 {
      %c8_i32 = arith.constant 8 : i32
      %13 = arith.muli %arg10, %c8_i32 : i32
      %14 = tpu.assume_multiple %13, 8 : i32
      %15 = arith.index_cast %14 : i32 to index
      %c0_13 = arith.constant 0 : index
      %16 = vector.load %arg5[%15, %c0_13] : memref<16x4xf32, #tpu.memory_space<vmem>>, vector<8x4xf32>
      %cst_14 = arith.constant dense<0.000000e+00> : vector<8x256xf32>
      %17 = tpu.matmul %16, %1, %cst_14 {dimension_numbers = #tpu.dot_dimension_numbers<[1], [0], [0], [1], [0, 0, 1, 1], [], []>} : vector<8x4xf32>, vector<4x256xf32>, vector<8x256xf32> -> vector<8x256xf32>
      %c0_15 = arith.constant 0 : index
      %18 = arith.index_cast %14 : i32 to index
      %c0_16 = arith.constant 0 : index
      %19 = vector.load %arg3[%c0_15, %18, %c0_16] : memref<1x16x256xf32, #tpu.memory_space<vmem>>, vector<1x8x256xf32>
      %20 = vector.shape_cast %19 : vector<1x8x256xf32> to vector<8x256xf32>
      %c0_17 = arith.constant 0 : index
      %21 = arith.index_cast %14 : i32 to index
      %c0_18 = arith.constant 0 : index
      %22 = vector.load %arg4[%c0_17, %21, %c0_18] : memref<1x16x256xf32, #tpu.memory_space<vmem>>, vector<1x8x256xf32>
      %23 = vector.shape_cast %22 : vector<1x8x256xf32> to vector<8x256xf32>
      %cst_19 = arith.constant dense<0.000000e+00> : vector<256x256xf32>
      %24 = tpu.matmul %17, %20, %cst_19 {dimension_numbers = #tpu.dot_dimension_numbers<[0], [0], [1], [1], [0, 1, 1, 1], [], []>} : vector<8x256xf32>, vector<8x256xf32>, vector<256x256xf32> -> vector<256x256xf32>
      %cst_20 = arith.constant dense<0xFF800000> : vector<256xf32>
      %25 = vector.multi_reduction <maximumf>, %24, %cst_20 [1] : vector<256x256xf32> to vector<256xf32>
      %26 = vector.shape_cast %25 : vector<256xf32> to vector<256x1xf32>
      %27 = vector.broadcast %26 : vector<256x1xf32> to vector<256x256xf32>
      %28 = arith.subf %24, %27 : vector<256x256xf32>
      %29 = math.exp %28 : vector<256x256xf32>
      %30 = tpu.concatenate %23, %2 in 0 : vector<8x256xf32>, vector<1x256xf32> -> vector<9x256xf32>
      %cst_21 = arith.constant dense<0.000000e+00> : vector<9x256xf32>
      %31 = tpu.matmul %30, %29, %cst_21 {dimension_numbers = #tpu.dot_dimension_numbers<[1], [1], [0], [0], [0, 0, 1, 0], [], []>} : vector<9x256xf32>, vector<256x256xf32>, vector<9x256xf32> -> vector<9x256xf32>
      %32 = vector.extract_strided_slice %31 {offsets = [8, 0], sizes = [1, 256], strides = [1, 1]} : vector<9x256xf32> to vector<1x256xf32>
      %33 = tpu.reciprocal %32 {approx = true} : vector<1x256xf32> -> vector<1x256xf32>
      %34 = vector.extract_strided_slice %31 {offsets = [0, 0], sizes = [8, 256], strides = [1, 1]} : vector<9x256xf32> to vector<8x256xf32>
      %35 = vector.broadcast %33 : vector<1x256xf32> to vector<8x256xf32>
      %36 = arith.mulf %34, %35 : vector<8x256xf32>
      %37 = arith.index_cast %14 : i32 to index
      %c0_22 = arith.constant 0 : index
      %38 = vector.load %arg9[%37, %c0_22] : memref<16x256xf32, #tpu.memory_space<vmem>>, vector<8x256xf32>
      tpu.vector_store %arg9[%37, %c0_22], %36 {strides = array<i32>} : memref<16x256xf32, #tpu.memory_space<vmem>>, vector<8x256xf32>,
    }
    %c2_i32_2 = arith.constant 2 : i32
    %c0_3 = arith.constant 0 : index
    %c0_4 = arith.constant 0 : index
    %4 = vector.load %arg6[%c0_3, %c0_4] : memref<4x16xf32, #tpu.memory_space<vmem>>, vector<4x16xf32>
    %c0_5 = arith.constant 0 : index
    %c0_6 = arith.constant 0 : index
    %5 = vector.load %arg9[%c0_5, %c0_6] : memref<16x256xf32, #tpu.memory_space<vmem>>, vector<16x256xf32>
    %cst_7 = arith.constant dense<0.000000e+00> : vector<4x256xf32>
    %6 = tpu.matmul %4, %5, %cst_7 {dimension_numbers = #tpu.dot_dimension_numbers<[1], [0], [0], [1], [0, 0, 1, 1], [], []>} : vector<4x16xf32>, vector<16x256xf32>, vector<4x256xf32> -> vector<4x256xf32>
    %c0_8 = arith.constant 0 : index
    %c0_9 = arith.constant 0 : index
    %7 = vector.load %arg7[%c0_8, %c0_9] : memref<4x1xf32, #tpu.memory_space<vmem>>, vector<4x1xf32>
    %8 = vector.broadcast %7 : vector<4x1xf32> to vector<4x256xf32>
    %9 = arith.addf %6, %8 : vector<4x256xf32>
    %c0_10 = arith.constant 0 : index
    %c0_11 = arith.constant 0 : index
    %c0_12 = arith.constant 0 : index
    %10 = vector.load %arg8[%c0_10, %c0_11, %c0_12] : memref<1x4x256xf32, #tpu.memory_space<vmem>>, vector<1x4x256xf32>
    %11 = vector.shape_cast %10 : vector<1x4x256xf32> to vector<4x256xf32>
    %12 = vector.shape_cast %9 : vector<4x256xf32> to vector<1x4x256xf32>
    tpu.vector_store %arg8[%c0_10, %c0_11, %c0_12], %12 {strides = array<i32>} : memref<1x4x256xf32, #tpu.memory_space<vmem>>, vector<1x4x256xf32>,
    return
  }
  func.func @transform_0(%arg0: i32, %arg1: i32) -> (i32, i32, i32) {
    %c0_i32 = arith.constant 0 : i32
    %c0_i32_0 = arith.constant 0 : i32
    return %arg0, %c0_i32, %arg1 : i32, i32, i32
  }
  func.func @transform_1(%arg0: i32, %arg1: i32) -> (i32, i32, i32) {
    %c0_i32 = arith.constant 0 : i32
    %c0_i32_0 = arith.constant 0 : i32
    %c0_i32_1 = arith.constant 0 : i32
    return %arg0, %c0_i32, %c0_i32_0 : i32, i32, i32
  }
  func.func @transform_2(%arg0: i32, %arg1: i32) -> (i32, i32, i32) {
    %c0_i32 = arith.constant 0 : i32
    %c0_i32_0 = arith.constant 0 : i32
    %c0_i32_1 = arith.constant 0 : i32
    return %arg0, %c0_i32, %c0_i32_0 : i32, i32, i32
  }
  func.func @transform_3(%arg0: i32, %arg1: i32) -> (i32, i32) {
    %c0_i32 = arith.constant 0 : i32
    %c0_i32_0 = arith.constant 0 : i32
    %c0_i32_1 = arith.constant 0 : i32
    return %c0_i32, %c0_i32_0 : i32, i32
  }
  func.func @transform_4(%arg0: i32, %arg1: i32) -> (i32, i32) {
    %c0_i32 = arith.constant 0 : i32
    %c0_i32_0 = arith.constant 0 : i32
    %c0_i32_1 = arith.constant 0 : i32
    return %c0_i32, %c0_i32_0 : i32, i32
  }
  func.func @transform_5(%arg0: i32, %arg1: i32) -> (i32, i32) {
    %c0_i32 = arith.constant 0 : i32
    %c0_i32_0 = arith.constant 0 : i32
    %c0_i32_1 = arith.constant 0 : i32
    return %c0_i32, %c0_i32_0 : i32, i32
  }
  func.func @transform_6(%arg0: i32, %arg1: i32) -> (i32, i32, i32) {
    %c0_i32 = arith.constant 0 : i32
    %c0_i32_0 = arith.constant 0 : i32
    return %arg0, %c0_i32, %arg1 : i32, i32, i32
  }
}

</mosaic_0001>

<bundles_post_ra>
// kernel: tpu_custom_call.1
= control target key start
LH: loop header
LB: loop body
LE: loop exit
PB: predicated region body
PF: predicated region fallthrough
CT: control target
= control target key end

     0   :  { %s2694_s0 = inlined_call_operand.vmem [shape: f32[2,4,256], index: 0, kind: input, shape index: {}]   ;;  %s2695_s1 = inlined_call_operand.hbm [shape: f32[2,16,256], index: 1, kind: input, shape index: {}]   ;;  %s2696_s2 = inlined_call_operand.hbm [shape: f32[2,16,256], index: 2, kind: input, shape index: {}]   ;;  %s2697_s3 = inlined_call_operand.vmem [shape: f32[16,4], index: 3, kind: input, shape index: {}]   ;;  %s2698_s4 = inlined_call_operand.vmem [shape: f32[4,16], index: 4, kind: input, shape index: {}]   ;;  %s2699_s5 = inlined_call_operand.vmem [shape: f32[4,1], index: 5, kind: input, shape index: {}]   ;;  %s2700_s6 = inlined_call_operand.hbm [shape: f32[2,4,256], index: 6, kind: output, shape index: {}]  }
   0x1   :  { %2720 = sst [smem:[#allocation27_spill]] %s2695_s1 }
   0x2   :  { %11 = vsyncpa [#allocation4], 0 }
   0x3   :  { %13 = vsyncpa [#allocation4 + $0x1], 0 }
   0x4   :  { %14 = vsyncpa [#allocation7], 0 }
   0x5   :  { %16 = vsyncpa [#allocation7 + $0x1], 0 }
   0x6   :  { %17 = vsyncpa [#allocation5], 0 }
   0x7   :  { %19 = vsyncpa [#allocation5 + $0x1], 0  ;;  %s2089_s21 = smov 0   ;;  %s2091_s22 = smov 0  }
   0x8   :  { %s2093_s23 = smov 0   ;;  %s2095_s24 = smov 0  }
   0x9   :  { %s2097_s25 = smov 0   ;;  %s2099_s26 = smov 0  }
   0xa LB: > { %s1506_s27 = sadd.s32 4294967295, %s2039_s26   ;;  %s1507_s28 = sadd.s32 4294967294, %s2039_s26   ;;  %s2039_s26 = sphi %s2099_s26, %s25_s26   ;;  %s2035_s25 = sphi %s2097_s25, %s2769_s25   ;;  %s2031_s24 = sphi %s2095_s24, %s2768_s24   ;;  %s2027_s23 = sphi %s2093_s23, %s2767_s23   ;;  %s2023_s22 = sphi %s2091_s22, %s2766_s22   ;;  %s2019_s21 = sphi %s2089_s21, %s2765_s21  }
   0xb   : > { %s37_s29 = sadd.s32 1, %s2035_s25  ;;  %s72_s30 = sadd.s32 1, %s2027_s23 }
   0xc   : > { %p39_p0 = scmp.ge.s32.totalorder %s37_s29, 2  ;;  %p79_p1 = scmp.ne.s32.totalorder %s2027_s23, %s2023_s22 }
   0xd   : > { %p80_p2 = scmp.eq.s32.totalorder %s2039_s26, 0  ;;  %p85_p3 = scmp.ne.s32.totalorder %s2023_s22, %s2019_s21 }
   0xe   : > { %s2771_s29 = smov (%p39_p0, %s37_s29), 0  ;;  %p86_p5 = scmp.eq.s32.totalorder %s1506_s27, 0 }
   0xf   : > { %2721 = sst [smem:[#allocation12_spill]] %s2771_s29  ;;  %p2130_p4 = por %p80_p2, %p79_p1 }
  0x10   : > { %s69_s8 = ssub.s32 %s2035_s25, %s2771_s29  ;;  %p200_p6 = scmp.eq.s32.totalorder %s1506_s27, 1 }
  0x11   : > { %p70_p7 = scmp.eq.s32.totalorder %s69_s8, 0  ;;  %p2136_p8 = por %p86_p5, %p85_p3 }
  0x12   : > { %p2140_p9 = por %p200_p6, %p79_p1  ;;  %p206_p10 = scmp.eq.s32.totalorder %s1507_s28, 1 }
  0x13   : > { %s2723_s9 = scalar_select %p2136_p8, 1, 0 }
  0x14   : > { %s2724_s10 = scalar_select %p2140_p9, 1, 0 }
  0x15   : > { %s2145_s11 = scalar_select %p70_p7, %s2027_s23, %s72_s30  }
  0x16   : > { %p2147_p11 = por %p206_p10, %p85_p3  ;;  %p1692_p13 = scmp.lt.s32.totalorder %s2039_s26, 2 }
  0x17   : > { %s2154_s13 = sand.u32 1, %s2027_s23   ;;  %s1568_s15 = sshll.u32 %s2035_s25, 9 }
  0x18   : > { %s2725_s12 = scalar_select %p2147_p11, 1, 0 }
  0x19   : > { %s2701_s14 = sshll.u32 %s2154_s13, 5  ;;  %s2726_s1 = sld [smem:[#allocation27_spill]] }
  0x1a   : > { %s252_s19 = scalar_lea.vmem [#allocation3], %s2701_s14  ;;  %p2171_p0 = pnand %p1692_p13, %p2130_p4 }
  0x1b   : > { %s259_s20 = sshll.u32 %s252_s19, 4  ;;  %s249_s28 = scalar_lea.sflag [#allocation4], %s2154_s13  ;;  %s2167_s20 = int_to_ptr.vmem [resolvable:$true] %s259_s20 }
  0x1c   : > { %p1891_p3 = pneg %p2171_p0 }
  0x1f   : > { %s2163_s18 = scalar_lea.hbm %s2726_s1, %s1568_s15  ;;  %s1894_s7 = scalar_lea.hbm %s2726_s1, 1024 }
  0x20   : > { %s1889_s30 = scalar_lea.hbm %s2163_s18, 512  ;;  %p1895_p4 = scmp.lt.u32.totalorder %s2163_s18, %s2726_s1 }
  0x21   : > { %p1890_p2 = scmp.ne.s32.totalorder %s2163_s18, %s1889_s30  ;;  %p1896_p7 = scmp.lt.u32.totalorder %s1894_s7, %s1889_s30 }
  0x22   : > { %p1898_p13 = scmp.lt.u32.totalorder %s1889_s30, %s2163_s18 }
  0x23   : > { %p1892_p5 = pnand %p1891_p3, %p1890_p2  ;;  %p1897_p10 = por %p1896_p7, %p1895_p4 }
  0x25   : > { %p1893_p6 = pneg %p1892_p5  ;;  %p1899_p12 = por %p1898_p13, %p1897_p10 }
  0x27   : > { %p1900_p1 = pnand %p1899_p12, %p1893_p6 }
  0x29   : > { %1903 = shalt.err (!%p1900_p1)
}
  0x2a   : > { %s1904_s14 = scalar_lea.vmem %s2167_s20, 512  ;;  %s2045_s8 = smov [#allocation3]  }
  0x2b   : > { %p1905_p2 = scmp.ne.s32.totalorder %s2167_s20, %s1904_s14  ;;  %s1909_s16 = sshll.u32 %s2045_s8, 4  ;;  %s1910_s16 = int_to_ptr.vmem [resolvable:$false] %s1909_s16 }
  0x2c   : > { %s1911_s17 = scalar_lea.vmem %s1910_s16, 1024  ;;  %p1912_p9 = scmp.lt.s32.totalorder %s2167_s20, %s1910_s16 }
  0x2d   : > { %p1907_p5 = pnand %p1905_p2, %p1891_p3  ;;  %p1913_p4 = scmp.lt.s32.totalorder %s1911_s17, %s1904_s14 }
  0x2f   : > { %p1908_p11 = pneg %p1907_p5  ;;  %p1914_p7 = por %p1913_p4, %p1912_p9 }
  0x31   : > { %p1915_p10 = pnand %p1914_p7, %p1908_p11 }
  0x33   : > { %1918 = shalt.err (!%p1915_p10)
}
  0x34   : > { %s2704_s30 = smov 256   ;;  %s2047_s7 = smov 16  }
  0x35   : > { %1684 = dma.hbm_to_vmem [thread:$0]  (!%p2171_p0), %s2163_s18, 512, %s2167_s20, %s249_s28, %s2704_s30, %s2704_s30, %s2047_s7  }
  0x36   : > { %p288_p9 = scmp.lt.s32.totalorder %s2039_s26, 3  ;;  %s2213_s8 = scalar_lea.hbm %s2696_s2, %s1568_s15 }
  0x37   : > { %p2728_p11 = scmp.ge.s32.totalorder %s2039_s26, 1  ;;  %s2730_s17 = sshll.u32 %s2154_s13, 5 }
  0x38   : > { %s273_s1 = scalar_lea.vmem [#allocation6], %s2730_s17  ;;  %s270_s18 = scalar_lea.sflag [#allocation7], %s2154_s13 }
  0x39   : > { %p2217_p12 = pnand %p2728_p11, %p288_p9  ;;  %s280_s29 = sshll.u32 %s273_s1, 4  ;;  %s2223_s29 = int_to_ptr.vmem [resolvable:$true] %s280_s29 }
  0x3a   : > { %s1919_s20 = scalar_lea.hbm %s2213_s8, 512  ;;  %s1924_s14 = scalar_lea.hbm %s2696_s2, 1024 }
  0x3b   : > { %p1920_p1 = scmp.ne.s32.totalorder %s2213_s8, %s1919_s20  ;;  %p1925_p2 = scmp.lt.u32.totalorder %s2213_s8, %s2696_s2 }
  0x3c   : > { %p1926_p5 = scmp.lt.u32.totalorder %s1924_s14, %s1919_s20  ;;  %p1928_p7 = scmp.lt.u32.totalorder %s1919_s20, %s2213_s8 }
  0x3d   : > { %p1922_p6 = pnand %p1920_p1, %p1891_p3 }
  0x3e   : > { %p1927_p4 = por %p1926_p5, %p1925_p2 }
  0x3f   : > { %p1923_p13 = pneg %p1922_p6 }
  0x40   : > { %p1929_p10 = por %p1928_p7, %p1927_p4 }
  0x42   : > { %p1930_p9 = pnand %p1929_p10, %p1923_p13 }
  0x44   : > { %1933 = shalt.err (!%p1930_p9)
}
  0x45   : > { %s1934_s1 = scalar_lea.vmem %s2223_s29, 512  ;;  %s2048_s17 = smov [#allocation6]  }
  0x46   : > { %p1935_p11 = scmp.ne.s32.totalorder %s2223_s29, %s1934_s1  ;;  %s1939_s15 = sshll.u32 %s2048_s17, 4  ;;  %s1940_s15 = int_to_ptr.vmem [resolvable:$false] %s1939_s15 }
  0x47   : > { %s1941_s30 = scalar_lea.vmem %s1940_s15, 1024  ;;  %p1942_p8 = scmp.lt.s32.totalorder %s2223_s29, %s1940_s15 }
  0x48   : > { %p1937_p1 = pnand %p1935_p11, %p1891_p3  ;;  %p1943_p2 = scmp.lt.s32.totalorder %s1941_s30, %s1934_s1 }
  0x4a   : > { %p1938_p6 = pneg %p1937_p1  ;;  %p1944_p5 = por %p1943_p2, %p1942_p8 }
  0x4c   : > { %p1945_p4 = pnand %p1944_p5, %p1938_p6 }
  0x4e   : > { %1948 = shalt.err (!%p1945_p4)
}
  0x4f   : > { %s2731_s20 = smov 256   ;;  %292 = sbr.rel (%p2217_p12) target bundleno = 1432 (0x598), region = 44 }
  0x50   : > { %1687 = dma.hbm_to_vmem [thread:$0]  (!%p2171_p0), %s2213_s8, 512, %s2223_s29, %s270_s18, %s2731_s20, %s2731_s20, %s2047_s7  }
  0x56   : > { %s2257_s28 = sand.u32 1, %s2023_s22   ;;  %p2732_p8 = scmp.ne.s32.totalorder %s2723_s9, 0 }
  0x57   : > { %s1517_s14 = sshll.u32 %s2257_s28, 5  ;;  %s295_s19 = scalar_lea.sflag [#allocation4], %s2257_s28 }
  0x58   : > { %s2261_s27 = scalar_lea.vmem [#allocation3], %s1517_s14 }
  0x59   : > { %2006 = dma.done.wait (%p2732_p8), %s295_s19, 512  }
  0x5a   : > { %2008 = vsyncadd (%p2732_p8), %s295_s19, 4294966784  ;;  %s304_s29 = scalar_lea.sflag [#allocation7], %s2257_s28  ;;  %s2268_s13 = scalar_lea.vmem [#allocation6], %s1517_s14 }
  0x5b   : > { %2010 = dma.done.wait (%p2732_p8), %s304_s29, 512  }
  0x5c   : > { %2012 = vsyncadd (%p2732_p8), %s304_s29, 4294966784  ;;  %p351_p0 = scmp.lt.s32.totalorder %s2031_s24, 1  ;;  %s1519_s7 = sshll.u32 %s2257_s28, 3 }
  0x5d   : > { %s2282_s15 = scalar_lea.vmem [#allocation8], %s1519_s7  ;;  %s2284_s30 = smov 0  }
  0x5e   : > { %s352_s8 = scalar_select %p351_p0, %s2031_s24, 1 }
  0x60   : > { %s1570_s16 = sshll.u32 %s352_s8, 3 }
  0x61   : > { %s358_s17 = scalar_lea.vmem %s2694_s0, %s1570_s16 }
  0x62   : > { %v2280_v0 = vld [vmem:[%s358_s17] sm:$0xff] }
  0x63   : > { %2733 = vst [vmem:[#allocation13_spill] sm:$0xff] %v2280_v0 }
  0x64 LB: >> { %vm377_vm0 = vcmask 1043456   ;;  %v2049_v2 = vmov 0.0   ;;  %s1522_s9 = sshll.u32 %s2043_s30, 3  ;;  %vm373_vm1 = vcmask 31744   ;;  %vm528_vm2 = vcmask 64512   ;;  %s367_s30 = sadd.s32 1, %s2043_s30   ;;  %s2043_s30 = sphi %s2284_s30, %s367_s30  }
  0x65   : >> { %446 = vmatprep.mubr.f32.mxu0 %v2049_v2  ;;  %689 = vmatprep.mubr.f32.mxu1 %v2049_v2  ;;  %s369_s19 = scalar_lea.vmem %s2697_s3, %s1522_s9  ;;  %s453_s29 = sshra.s32 %s1522_s9, 3 }
  0x66   : >> { %v370_v3 = vld [vmem:[%s369_s19] sm:$0xff]  ;;  %s2298_s7 = sshll.u32 %s453_s29, 4  ;;  %p364_p3 = scmp.ge.s32.totalorder %s367_s30, 2  }
  0x67   : >> { %s457_s8 = scalar_lea.vmem %s2261_s27, %s2298_s7 [#allocation3]  ;;  %s2572_s16 = scalar_lea.vmem %s2268_s13, %s2298_s7 [#allocation6]  ;;  %vm1274_vm3 = vcmask (%p364_p3), 130048  }
  0x68   : >> { %v459_v4 = vld [vmem:[%s457_s8 + $0x8] sm:$0xff]  ;;  %v458_v5 = vld [vmem:[%s457_s8] sm:$0xff]  ;;  %s1260_s18 = scalar_lea.vmem [#allocation2], %s2298_s7  ;;  %s1574_s30 = sshll.u32 (%p364_p3), %s2031_s24, 7 }
  0x69   : >> { %625 = vmatprep.subr.mxu1 %v459_v4  ;;  %s1371_s9 = sshll.u32 (%p364_p3), %s2282_s15, 4  ;;  %s2644_s19 = scalar_lea.hbm (%p364_p3), %s2700_s6, %s1574_s30  ;;  %s2646_s9 = int_to_ptr.vmem [resolvable:$true] %s1371_s9 }
  0x6a   : >> { %v2734_v0 = vld [vmem:[#allocation13_spill] sm:$0xff]  ;;  %626 = vmatpush1.msra.mxu1 %v458_v5  ;;  %s1355_s29 = scalar_lea.sflag (%p364_p3), [#allocation5], %s2257_s28  ;;  %s1949_s7 = scalar_lea.vmem (%p364_p3), %s2646_s9, 128 }
  0x6b   : >> { %v372_v1 = vcombine.high %v2734_v0, %v2734_v0  ;;  %p1950_p12 = scmp.ne.s32.totalorder (%p364_p3), %s2646_s9, %s1949_s7  ;;  %p2761_p13 = scmp.ne.s32.totalorder (%p364_p3), %s2724_s10, 0 }
  0x6c   : > { %s2053_s24 = smov (%p364_p3), [#allocation8]  }
  0x6d   : >> { %1523 = vmatprep.subr.msk.mxu0 %vm377_vm0, %v372_v1  ;;  %p1951_p7 = pnand (%p364_p3), %p1950_p12, %p2761_p13  ;;  %s1953_s8 = sshll.u32 (%p364_p3), %s2053_s24, 4  ;;  %s1954_s8 = int_to_ptr.vmem [resolvable:$false] %s1953_s8 }
  0x6e   : >> { %1524 = vmatpush1.msk.msra.mxu0 %vm377_vm0, %v2734_v0  ;;  %p1956_p9 = scmp.lt.s32.totalorder (%p364_p3), %s2646_s9, %s1954_s8 }
  0x6f   : >> { %1525 = vmatmul.mubr.msk.f32.vlgmr.msra.gmra.mrb[0].mxu0 %vm373_vm1, %v370_v3  ;;  %p1952_p10 = pneg (%p364_p3), %p1951_p7 }
 0x142   : >> { %v448_v6 = vpop.f32.mrb[0].mxu0 }
 0x143   : >> { %464 = vxpose.xlu0.b32.start.end [1/1] (short) %v448_v6, 128  ;;  %v450_v7 = vpop.f32.mrb[1].mxu0 }
 0x180   : >> { %496 = vxpose.xlu0.b32.start.end [1/1] (short) %v450_v7, 128 }
 0x1c3   : >> { %v480_v8 = vpop.trf.xlu0 }
 0x1c4   : >> { %1529 = vmatmul.mubr.msk.f32.vlgmr.msra.gmra.mrb[0].mxu1 %vm528_vm2, %v480_v8 }
 0x1c5   : >> { %695 = vmatprep.mubr.f32.mxu1 %v2049_v2 }
 0x1c7   : >> { %v481_v9 = vpop.trf.xlu0 }
 0x1c8   : >> { %1530 = vmatmul.mubr.msk.f32.gmra.mrb[2].mxu1 %vm528_vm2, %v481_v9 }
 0x1c9   : >> { %701 = vmatprep.mubr.f32.mxu1 %v2049_v2 }
 0x1cb   : >> { %v482_v10 = vpop.trf.xlu0 }
 0x1cc   : >> { %1531 = vmatmul.mubr.msk.f32.gmra.mrb[4].mxu1 %vm528_vm2, %v482_v10 }
 0x1cd   : >> { %707 = vmatprep.mubr.f32.mxu1 %v2049_v2 }
 0x1cf   : >> { %v483_v11 = vpop.trf.xlu0 }
 0x1d0   : >> { %1532 = vmatmul.mubr.msk.f32.gmra.mrb[6].mxu1 %vm528_vm2, %v483_v11 }
 0x1d1   : >> { %713 = vmatprep.mubr.f32.mxu1 %v2049_v2 }
 0x1d3   : >> { %v484_v12 = vpop.trf.xlu0 }
 0x1d4   : >> { %1533 = vmatmul.mubr.msk.f32.gmra.mrb[8].mxu1 %vm528_vm2, %v484_v12 }
 0x1d5   : >> { %719 = vmatprep.mubr.f32.mxu1 %v2049_v2 }
 0x1d7   : >> { %v485_v13 = vpop.trf.xlu0 }
 0x1d8   : >> { %1534 = vmatmul.mubr.msk.f32.gmra.mrb[10].mxu1 %vm528_vm2, %v485_v13 }
 0x1d9   : >> { %725 = vmatprep.mubr.f32.mxu1 %v2049_v2 }
 0x1db   : >> { %v486_v14 = vpop.trf.xlu0 }
 0x1dc   : >> { %1535 = vmatmul.mubr.msk.f32.gmra.mrb[12].mxu1 %vm528_vm2, %v486_v14 }
 0x1dd   : >> { %731 = vmatprep.mubr.f32.mxu1 %v2049_v2 }
 0x1df   : >> { %v487_v15 = vpop.trf.xlu0 }
 0x1e0   : >> { %1536 = vmatmul.mubr.msk.f32.gmra.mrb[14].mxu1 %vm528_vm2, %v487_v15 }
 0x1e1   : >> { %737 = vmatprep.mubr.f32.mxu1 %v2049_v2 }
 0x1e3   : >> { %v488_v16 = vpop.trf.xlu0 }
 0x1e4   : >> { %1537 = vmatmul.mubr.msk.f32.gmra.mrb[16].mxu1 %vm528_vm2, %v488_v16 }
 0x1e5   : >> { %743 = vmatprep.mubr.f32.mxu1 %v2049_v2 }
 0x1e7   : >> { %v489_v17 = vpop.trf.xlu0 }
 0x1e8   : >> { %1538 = vmatmul.mubr.msk.f32.gmra.mrb[18].mxu1 %vm528_vm2, %v489_v17 }
 0x1e9   : >> { %749 = vmatprep.mubr.f32.mxu1 %v2049_v2 }
 0x1eb   : >> { %v490_v18 = vpop.trf.xlu0 }
 0x1ec   : >> { %1539 = vmatmul.mubr.msk.f32.gmra.mrb[20].mxu1 %vm528_vm2, %v490_v18 }
 0x1ed   : >> { %755 = vmatprep.mubr.f32.mxu1 %v2049_v2 }
 0x1ef   : >> { %v491_v19 = vpop.trf.xlu0 }
 0x1f0   : >> { %1540 = vmatmul.mubr.msk.f32.gmra.mrb[22].mxu1 %vm528_vm2, %v491_v19 }
 0x1f1   : >> { %761 = vmatprep.mubr.f32.mxu1 %v2049_v2 }
 0x1f3   : >> { %v492_v20 = vpop.trf.xlu0 }
 0x1f4   : >> { %1541 = vmatmul.mubr.msk.f32.gmra.mrb[24].mxu1 %vm528_vm2, %v492_v20 }
 0x1f5   : >> { %767 = vmatprep.mubr.f32.mxu1 %v2049_v2 }
 0x1f7   : >> { %v493_v21 = vpop.trf.xlu0 }
 0x1f8   : >> { %1542 = vmatmul.mubr.msk.f32.gmra.mrb[26].mxu1 %vm528_vm2, %v493_v21 }
 0x1f9   : >> { %773 = vmatprep.mubr.f32.mxu1 %v2049_v2 }
 0x1fb   : >> { %v494_v22 = vpop.trf.xlu0 }
 0x1fc   : >> { %1543 = vmatmul.mubr.msk.f32.gmra.mrb[28].mxu1 %vm528_vm2, %v494_v22 }
 0x1fd   : >> { %779 = vmatprep.mubr.f32.mxu1 %v2049_v2 }
 0x1ff   : >> { %v495_v23 = vpop.trf.xlu0 }
 0x200   : >> { %1544 = vmatmul.mubr.msk.f32.gmra.mrb[30].mxu1 %vm528_vm2, %v495_v23 }
 0x201   : >> { %785 = vmatprep.mubr.f32.mxu1 %v2049_v2 }
 0x203   : >> { %v512_v24 = vpop.trf.xlu0 }
 0x204   : >> { %1545 = vmatmul.mubr.msk.f32.gmra.mrb[32].mxu1 %vm528_vm2, %v512_v24 }
 0x205   : >> { %791 = vmatprep.mubr.f32.mxu1 %v2049_v2 }
 0x207   : >> { %v513_v25 = vpop.trf.xlu0 }
 0x208   : >> { %1546 = vmatmul.mubr.msk.f32.gmra.mrb[34].mxu1 %vm528_vm2, %v513_v25 }
 0x209   : >> { %797 = vmatprep.mubr.f32.mxu1 %v2049_v2 }
 0x20b   : >> { %v514_v26 = vpop.trf.xlu0 }
 0x20c   : >> { %1547 = vmatmul.mubr.msk.f32.gmra.mrb[36].mxu1 %vm528_vm2, %v514_v26 }
 0x20d   : >> { %803 = vmatprep.mubr.f32.mxu1 %v2049_v2 }
 0x20f   : >> { %v515_v27 = vpop.trf.xlu0 }
 0x210   : >> { %1548 = vmatmul.mubr.msk.f32.gmra.mrb[38].mxu1 %vm528_vm2, %v515_v27 }
 0x211   : >> { %809 = vmatprep.mubr.f32.mxu1 %v2049_v2 }
 0x213   : >> { %v516_v28 = vpop.trf.xlu0 }
 0x214   : >> { %1549 = vmatmul.mubr.msk.f32.gmra.mrb[40].mxu1 %vm528_vm2, %v516_v28 }
 0x215   : >> { %815 = vmatprep.mubr.f32.mxu1 %v2049_v2 }
 0x217   : >> { %v517_v29 = vpop.trf.xlu0 }
 0x218   : >> { %1550 = vmatmul.mubr.msk.f32.gmra.mrb[42].mxu1 %vm528_vm2, %v517_v29 }
 0x219   : >> { %821 = vmatprep.mubr.f32.mxu1 %v2049_v2 }
 0x21b   : >> { %v518_v30 = vpop.trf.xlu0 }
 0x21c   : >> { %1551 = vmatmul.mubr.msk.f32.gmra.mrb[44].mxu1 %vm528_vm2, %v518_v30 }
 0x21d   : >> { %827 = vmatprep.mubr.f32.mxu1 %v2049_v2 }
 0x21f   : >> { %v519_v31 = vpop.trf.xlu0 }
 0x220   : >> { %1552 = vmatmul.mubr.msk.f32.gmra.mrb[46].mxu1 %vm528_vm2, %v519_v31 }
 0x221   : >> { %833 = vmatprep.mubr.f32.mxu1 %v2049_v2 }
 0x223   : >> { %v520_v32 = vpop.trf.xlu0 }
 0x224   : >> { %1553 = vmatmul.mubr.msk.f32.gmra.mrb[48].mxu1 %vm528_vm2, %v520_v32 }
 0x225   : >> { %839 = vmatprep.mubr.f32.mxu1 %v2049_v2 }
 0x227   : >> { %v521_v33 = vpop.trf.xlu0 }
 0x228   : >> { %1554 = vmatmul.mubr.msk.f32.gmra.mrb[50].mxu1 %vm528_vm2, %v521_v33 }
 0x229   : >> { %845 = vmatprep.mubr.f32.mxu1 %v2049_v2 }
 0x22b   : >> { %v522_v34 = vpop.trf.xlu0 }
 0x22c   : >> { %1555 = vmatmul.mubr.msk.f32.gmra.mrb[52].mxu1 %vm528_vm2, %v522_v34 }
 0x22d   : >> { %851 = vmatprep.mubr.f32.mxu1 %v2049_v2 }
 0x22f   : >> { %v523_v35 = vpop.trf.xlu0 }
 0x230   : >> { %1556 = vmatmul.mubr.msk.f32.gmra.mrb[54].mxu1 %vm528_vm2, %v523_v35 }
 0x231   : >> { %857 = vmatprep.mubr.f32.mxu1 %v2049_v2 }
 0x233   : >> { %v524_v36 = vpop.trf.xlu0 }
 0x234   : >> { %1557 = vmatmul.mubr.msk.f32.gmra.mrb[56].mxu1 %vm528_vm2, %v524_v36 }
 0x235   : >> { %863 = vmatprep.mubr.f32.mxu1 %v2049_v2 }
 0x237   : >> { %v525_v37 = vpop.trf.xlu0 }
 0x238   : >> { %1558 = vmatmul.mubr.msk.f32.gmra.mrb[58].mxu1 %vm528_vm2, %v525_v37 }
 0x239   : >> { %869 = vmatprep.mubr.f32.mxu1 %v2049_v2 }
 0x23b   : >> { %v526_v38 = vpop.trf.xlu0 }
 0x23c   : >> { %1559 = vmatmul.mubr.msk.f32.gmra.mrb[60].mxu1 %vm528_vm2, %v526_v38 }
 0x23d   : >> { %875 = vmatprep.mubr.f32.mxu1 %v2049_v2 }
 0x23f   : >> { %v527_v39 = vpop.trf.xlu0 }
 0x240   : >> { %1560 = vmatmul.mubr.msk.f32.gmra.mrb[62].mxu1 %vm528_vm2, %v527_v39 }
 0x297   : >> { %v2365_v40 = vpop.f32.mrb[0].mxu1 }
 0x298   : >> { %v2367_v41 = vpop.f32.mrb[1].mxu1 }
 0x299   : >> { %v882_v42 = vmax.f32 %v2365_v40, %v2367_v41 }
 0x29b   : >> { %883 = vmax.xlane.f32.xlu1 %v882_v42  ;;  %v2371_v43 = vpop.f32.mrb[2].mxu1 }
 0x29c   : >> { %v2373_v44 = vpop.f32.mrb[3].mxu1 }
 0x29d   : >> { %v885_v45 = vmax.f32 %v2371_v43, %v2373_v44 }
 0x29f   : >> { %886 = vmax.xlane.f32.xlu1 %v885_v45  ;;  %v2377_v46 = vpop.f32.mrb[4].mxu1 }
 0x2a0   : >> { %v2379_v47 = vpop.f32.mrb[5].mxu1 }
 0x2a1   : >> { %v888_v48 = vmax.f32 %v2377_v46, %v2379_v47 }
 0x2a3   : >> { %889 = vmax.xlane.f32.xlu1 %v888_v48  ;;  %v2383_v49 = vpop.f32.mrb[6].mxu1 }
 0x2a4   : >> { %v2385_v50 = vpop.f32.mrb[7].mxu1 }
 0x2a5   : >> { %v891_v51 = vmax.f32 %v2383_v49, %v2385_v50 }
 0x2a7   : >> { %892 = vmax.xlane.f32.xlu1 %v891_v51  ;;  %v2389_v52 = vpop.f32.mrb[8].mxu1 }
 0x2a8   : >> { %v2391_v53 = vpop.f32.mrb[9].mxu1 }
 0x2a9   : >> { %v894_v54 = vmax.f32 %v2389_v52, %v2391_v53 }
 0x2ab   : >> { %895 = vmax.xlane.f32.xlu1 %v894_v54  ;;  %v2395_v55 = vpop.f32.mrb[10].mxu1 }
 0x2ac   : >> { %v2397_v56 = vpop.f32.mrb[11].mxu1 }
 0x2ad   : >> { %v897_v57 = vmax.f32 %v2395_v55, %v2397_v56 }
 0x2af   : >> { %898 = vmax.xlane.f32.xlu1 %v897_v57  ;;  %v2401_v58 = vpop.f32.mrb[12].mxu1 }
 0x2b0   : >> { %v2403_v59 = vpop.f32.mrb[13].mxu1 }
 0x2b1   : >> { %v900_v60 = vmax.f32 %v2401_v58, %v2403_v59 }
 0x2b3   : >> { %901 = vmax.xlane.f32.xlu1 %v900_v60  ;;  %v2407_v61 = vpop.f32.mrb[14].mxu1 }
 0x2b4   : >> { %v2409_v62 = vpop.f32.mrb[15].mxu1 }
 0x2b5   : >> { %v903_v63 = vmax.f32 %v2407_v61, %v2409_v62 }
 0x2b7   : >> { %904 = vmax.xlane.f32.xlu1 %v903_v63  ;;  %v2413_v1 = vpop.f32.mrb[16].mxu1 }
 0x2b8   : >> { %v2415_v2 = vpop.f32.mrb[17].mxu1 }
 0x2b9   : >> { %v906_v3 = vmax.f32 %v2413_v1, %v2415_v2 }
 0x2bb   : >> { %907 = vmax.xlane.f32.xlu1 %v906_v3  ;;  %v2419_v4 = vpop.f32.mrb[18].mxu1 }
 0x2bc   : >> { %v2421_v5 = vpop.f32.mrb[19].mxu1 }
 0x2bd   : >> { %v909_v6 = vmax.f32 %v2419_v4, %v2421_v5 }
 0x2bf   : >> { %910 = vmax.xlane.f32.xlu1 %v909_v6  ;;  %v2425_v7 = vpop.f32.mrb[20].mxu1 }
 0x2c0   : >> { %v2427_v8 = vpop.f32.mrb[21].mxu1 }
 0x2c1   : >> { %v912_v9 = vmax.f32 %v2425_v7, %v2427_v8 }
 0x2c3   : >> { %913 = vmax.xlane.f32.xlu1 %v912_v9  ;;  %v2431_v10 = vpop.f32.mrb[22].mxu1 }
 0x2c4   : >> { %v2433_v11 = vpop.f32.mrb[23].mxu1 }
 0x2c5   : >> { %v915_v12 = vmax.f32 %v2431_v10, %v2433_v11 }
 0x2c7   : >> { %916 = vmax.xlane.f32.xlu1 %v915_v12  ;;  %v2437_v13 = vpop.f32.mrb[24].mxu1 }
 0x2c8   : >> { %v2439_v14 = vpop.f32.mrb[25].mxu1 }
 0x2c9   : >> { %v918_v15 = vmax.f32 %v2437_v13, %v2439_v14 }
 0x2cb   : >> { %919 = vmax.xlane.f32.xlu1 %v918_v15  ;;  %v2443_v16 = vpop.f32.mrb[26].mxu1 }
 0x2cc   : >> { %v2445_v17 = vpop.f32.mrb[27].mxu1 }
 0x2cd   : >> { %v921_v18 = vmax.f32 %v2443_v16, %v2445_v17 }
 0x2cf   : >> { %922 = vmax.xlane.f32.xlu1 %v921_v18  ;;  %v2449_v19 = vpop.f32.mrb[28].mxu1 }
 0x2d0   : >> { %v2451_v20 = vpop.f32.mrb[29].mxu1 }
 0x2d1   : >> { %v924_v21 = vmax.f32 %v2449_v19, %v2451_v20 }
 0x2d3   : >> { %925 = vmax.xlane.f32.xlu1 %v924_v21  ;;  %v2455_v22 = vpop.f32.mrb[30].mxu1 }
 0x2d4   : >> { %v2457_v23 = vpop.f32.mrb[31].mxu1 }
 0x2d5   : >> { %v927_v24 = vmax.f32 %v2455_v22, %v2457_v23 }
 0x2d7   : >> { %928 = vmax.xlane.f32.xlu1 %v927_v24  ;;  %v2461_v25 = vpop.f32.mrb[32].mxu1 }
 0x2d8   : >> { %v2463_v26 = vpop.f32.mrb[33].mxu1 }
 0x2d9   : >> { %v930_v27 = vmax.f32 %v2461_v25, %v2463_v26 }
 0x2db   : >> { %931 = vmax.xlane.f32.xlu1 %v930_v27  ;;  %v2467_v28 = vpop.f32.mrb[34].mxu1 }
 0x2dc   : >> { %v2469_v29 = vpop.f32.mrb[35].mxu1 }
 0x2dd   : >> { %v933_v30 = vmax.f32 %v2467_v28, %v2469_v29 }
 0x2df   : >> { %934 = vmax.xlane.f32.xlu0 %v933_v30  ;;  %v2473_v31 = vpop.f32.mrb[36].mxu1 }
 0x2e0   : >> { %v2475_v32 = vpop.f32.mrb[37].mxu1 }
 0x2e1   : >> { %v936_v33 = vmax.f32 %v2473_v31, %v2475_v32 }
 0x2e3   : >> { %937 = vmax.xlane.f32.xlu1 %v936_v33  ;;  %v2479_v34 = vpop.f32.mrb[38].mxu1 }
 0x2e4   : >> { %v2481_v35 = vpop.f32.mrb[39].mxu1 }
 0x2e5   : >> { %v939_v36 = vmax.f32 %v2479_v34, %v2481_v35 }
 0x2e7   : >> { %940 = vmax.xlane.f32.xlu1 %v939_v36  ;;  %v2485_v37 = vpop.f32.mrb[40].mxu1 }
 0x2e8   : >> { %v2487_v38 = vpop.f32.mrb[41].mxu1 }
 0x2e9   : >> { %v942_v39 = vmax.f32 %v2485_v37, %v2487_v38 }
 0x2eb   : >> { %943 = vmax.xlane.f32.xlu1 %v942_v39  ;;  %v2491_v42 = vpop.f32.mrb[42].mxu1 }
 0x2ec   : >> { %v2493_v45 = vpop.f32.mrb[43].mxu1 }
 0x2ed   : >> { %v945_v48 = vmax.f32 %v2491_v42, %v2493_v45 }
 0x2ef   : >> { %946 = vmax.xlane.f32.xlu1 %v945_v48  ;;  %v2497_v51 = vpop.f32.mrb[44].mxu1 }
 0x2f0   : >> { %v2499_v54 = vpop.f32.mrb[45].mxu1 }
 0x2f1   : >> { %v948_v57 = vmax.f32 %v2497_v51, %v2499_v54 }
 0x2f3   : >> { %949 = vmax.xlane.f32.xlu1 %v948_v57  ;;  %v2503_v60 = vpop.f32.mrb[46].mxu1 }
 0x2f4   : >> { %v2505_v63 = vpop.f32.mrb[47].mxu1 }
 0x2f5   : >> { %v951_v3 = vmax.f32 %v2503_v60, %v2505_v63 }
 0x2f7   : >> { %952 = vmax.xlane.f32.xlu1 %v951_v3  ;;  %v2509_v6 = vpop.f32.mrb[48].mxu1 }
 0x2f8   : >> { %v2511_v9 = vpop.f32.mrb[49].mxu1 }
 0x2f9   : >> { %v954_v12 = vmax.f32 %v2509_v6, %v2511_v9 }
 0x2fb   : >> { %955 = vmax.xlane.f32.xlu1 %v954_v12  ;;  %v2515_v15 = vpop.f32.mrb[50].mxu1 }
 0x2fc   : >> { %2735 = vst [vmem:[#allocation14_spill] sm:$0xff] %v2515_v15  ;;  %v2517_v18 = vpop.f32.mrb[51].mxu1 }
 0x2fd   : >> { %2736 = vst [vmem:[#allocation15_spill] sm:$0xff] %v2517_v18  ;;  %v957_v21 = vmax.f32 %v2515_v15, %v2517_v18 }
 0x2ff   : >> { %958 = vmax.xlane.f32.xlu1 %v957_v21  ;;  %v2521_v24 = vpop.f32.mrb[52].mxu1 }
 0x300   : >> { %2737 = vst [vmem:[#allocation16_spill] sm:$0xff] %v2521_v24  ;;  %v2523_v27 = vpop.f32.mrb[53].mxu1 }
 0x301   : >> { %2738 = vst [vmem:[#allocation17_spill] sm:$0xff] %v2523_v27  ;;  %v960_v30 = vmax.f32 %v2521_v24, %v2523_v27 }
 0x303   : >> { %961 = vmax.xlane.f32.xlu1 %v960_v30  ;;  %v2527_v33 = vpop.f32.mrb[54].mxu1 }
 0x304   : >> { %2739 = vst [vmem:[#allocation18_spill] sm:$0xff] %v2527_v33  ;;  %v2529_v36 = vpop.f32.mrb[55].mxu1 }
 0x305   : >> { %2740 = vst [vmem:[#allocation19_spill] sm:$0xff] %v2529_v36  ;;  %v963_v39 = vmax.f32 %v2527_v33, %v2529_v36 }
 0x307   : >> { %964 = vmax.xlane.f32.xlu1 %v963_v39  ;;  %v2533_v48 = vpop.f32.mrb[56].mxu1 }
 0x308   : >> { %2741 = vst [vmem:[#allocation20_spill] sm:$0xff] %v2533_v48  ;;  %v2535_v57 = vpop.f32.mrb[57].mxu1 }
 0x309   : >> { %2742 = vst [vmem:[#allocation21_spill] sm:$0xff] %v2535_v57  ;;  %v966_v3 = vmax.f32 %v2533_v48, %v2535_v57 }
 0x30b   : >> { %967 = vmax.xlane.f32.xlu1 %v966_v3  ;;  %v2539_v12 = vpop.f32.mrb[58].mxu1 }
 0x30c   : >> { %2743 = vst [vmem:[#allocation22_spill] sm:$0xff] %v2539_v12  ;;  %v2541_v21 = vpop.f32.mrb[59].mxu1 }
 0x30d   : >> { %2744 = vst [vmem:[#allocation23_spill] sm:$0xff] %v2541_v21  ;;  %v969_v30 = vmax.f32 %v2539_v12, %v2541_v21 }
 0x30f   : >> { %970 = vmax.xlane.f32.xlu1 %v969_v30  ;;  %v2545_v0 = vpop.f32.mrb[60].mxu1 }
 0x310   : >> { %2745 = vst [vmem:[#allocation24_spill] sm:$0xff] %v2545_v0  ;;  %v2547_v36 = vpop.f32.mrb[61].mxu1 }
 0x311   : >> { %2746 = vst [vmem:[#allocation25_spill] sm:$0xff] %v2547_v36  ;;  %v972_v39 = vmax.f32 %v2545_v0, %v2547_v36 }
 0x313   : >> { %973 = vmax.xlane.f32.xlu1 %v972_v39  ;;  %v2551_v33 = vpop.f32.mrb[62].mxu1 }
 0x314   : >> { %v2553_v57 = vpop.f32.mrb[63].mxu1 }
 0x315   : >> { %2747 = vst [vmem:[#allocation26_spill] sm:$0xff] %v2553_v57  ;;  %v975_v3 = vmax.f32 %v2551_v33, %v2553_v57 }
 0x317   : >> { %976 = vmax.xlane.f32.xlu1 %v975_v3 }
 0x328   : >> { %v884_v48 = vpop.xlane.xlu1 %883 }
 0x329   : >> { %v978_v21 = vsub.f32 %v2365_v40, %v884_v48  ;;  %v979_v30 = vsub.f32 %v2367_v41, %v884_v48 }
 0x32b   : >> { %v1042_v12 = vmul.f32 1.442695, %v978_v21  ;;  %v1044_v27 = vmul.f32 1.442695, %v979_v30 }
 0x32c   : >> { %v887_v24 = vpop.xlane.xlu1 %886 }
 0x32d   : >> { %v980_v18 = vsub.f32 %v2371_v43, %v887_v24  ;;  %v981_v39 = vsub.f32 %v2373_v44, %v887_v24  ;;  %1756 = vpow2.f32 %v1042_v12 }
 0x32e   : >> { %1758 = vpow2.f32 %v1044_v27 }
 0x32f   : >> { %v1046_v36 = vmul.f32 1.442695, %v980_v18  ;;  %v1048_v0 = vmul.f32 1.442695, %v981_v39 }
 0x330   : >> { %v890_v15 = vpop.xlane.xlu1 %889 }
 0x331   : >> { %1760 = vpow2.f32 %v1046_v36  ;;  %v982_v3 = vsub.f32 %v2377_v46, %v890_v15  ;;  %v983_v57 = vsub.f32 %v2379_v47, %v890_v15  ;;  %v2050_v47 = vmov 1.0  }
 0x332   : >> { %1762 = vpow2.f32 %v1048_v0  ;;  %1240 = vmatprep.mubr.f32.mxu1 %v2050_v47 }
 0x333   : >> { %v1050_v40 = vmul.f32 1.442695, %v982_v3  ;;  %v1052_v41 = vmul.f32 1.442695, %v983_v57 }
 0x334   : >> { %v893_v48 = vpop.xlane.xlu1 %892 }
 0x335   : >> { %v984_v21 = vsub.f32 %v2383_v49, %v893_v48  ;;  %v985_v43 = vsub.f32 %v2385_v50, %v893_v48  ;;  %1764 = vpow2.f32 %v1050_v40  ;;  %v463_v48 = vld [vmem:[%s2572_s16 + $0x8] sm:$0xff] }
 0x336   : >> { %1766 = vpow2.f32 %v1052_v41  ;;  %1234 = vmatprep.mubr.f32.mxu0 %v463_v48 }
 0x337   : >> { %v1054_v44 = vmul.f32 1.442695, %v984_v21  ;;  %v1056_v24 = vmul.f32 1.442695, %v985_v43  ;;  %v1757_v27 = vpop.eup %1756 }
 0x338   : >> { %v896_v18 = vpop.xlane.xlu1 %895  ;;  %v1759_v0 = vpop.eup %1758 }
 0x339   : >> { %1768 = vpow2.f32 %v1054_v44  ;;  %v986_v36 = vsub.f32 %v2389_v52, %v896_v18  ;;  %v987_v46 = vsub.f32 %v2391_v53, %v896_v18 }
 0x33a   : >> { %1770 = vpow2.f32 %v1056_v24 }
 0x33b   : >> { %v1761_v49 = vpop.eup %1760  ;;  %v1058_v50 = vmul.f32 1.442695, %v986_v36  ;;  %v1060_v57 = vmul.f32 1.442695, %v987_v46 }
 0x33c   : >> { %v1763_v15 = vpop.eup %1762  ;;  %v899_v12 = vpop.xlane.xlu1 %898  ;;  %v1577_v30 = vpack.c.bf16 %v1761_v49, %v1757_v27 }
 0x33d   : >> { %v988_v39 = vsub.f32 %v2395_v55, %v899_v12  ;;  %v989_v3 = vsub.f32 %v2397_v56, %v899_v12  ;;  %v1575_v52 = vpack.c.bf16 %v1763_v15, %v1759_v0  ;;  %1772 = vpow2.f32 %v1058_v50 }
 0x33e   : >> { %1774 = vpow2.f32 %v1060_v57 }
 0x33f   : >> { %v1062_v53 = vmul.f32 1.442695, %v988_v39  ;;  %v1064_v40 = vmul.f32 1.442695, %v989_v3  ;;  %1576 = vmatprep.subr.bf16.mxu0 %v1575_v52  ;;  %1643 = vmatprep.subr.bf16.mxu1 %v1575_v52  ;;  %v1765_v21 = vpop.eup %1764 }
 0x340   : >> { %1578 = vmatpush1.bf16.xpose.msra.mxu0 %v1577_v30  ;;  %1659 = vmatpush1.bf16.xpose.msra.mxu1 %v1577_v30  ;;  %v902_v41 = vpop.xlane.xlu1 %901  ;;  %v1767_v43 = vpop.eup %1766 }
 0x341   : >> { %1776 = vpow2.f32 %v1062_v53  ;;  %v990_v55 = vsub.f32 %v2401_v58, %v902_v41  ;;  %v991_v56 = vsub.f32 %v2403_v59, %v902_v41 }
 0x342   : >> { %1778 = vpow2.f32 %v1064_v40 }
 0x343   : >> { %v1769_v44 = vpop.eup %1768  ;;  %v1066_v24 = vmul.f32 1.442695, %v990_v55  ;;  %v1068_v27 = vmul.f32 1.442695, %v991_v56 }
 0x344   : >> { %v1771_v18 = vpop.eup %1770  ;;  %v905_v36 = vpop.xlane.xlu1 %904  ;;  %v1581_v46 = vpack.c.bf16 %v1769_v44, %v1765_v21 }
 0x345   : >> { %v992_v0 = vsub.f32 %v2407_v61, %v905_v36  ;;  %v993_v49 = vsub.f32 %v2409_v62, %v905_v36  ;;  %v1579_v50 = vpack.c.bf16 %v1771_v18, %v1767_v43  ;;  %1780 = vpow2.f32 %v1066_v24 }
 0x346   : >> { %1782 = vpow2.f32 %v1068_v27 }
 0x347   : >> { %v1070_v15 = vmul.f32 1.442695, %v992_v0  ;;  %v1072_v57 = vmul.f32 1.442695, %v993_v49  ;;  %1580 = vmatprep.subr.bf16.mxu0 %v1579_v50  ;;  %1644 = vmatprep.subr.bf16.mxu1 %v1579_v50  ;;  %v1773_v59 = vpop.eup %1772 }
 0x348   : >> { %1582 = vmatpush1.bf16.xpose.msra.mxu0 %v1581_v46  ;;  %1660 = vmatpush1.bf16.xpose.msra.mxu1 %v1581_v46  ;;  %v908_v58 = vpop.xlane.xlu1 %907  ;;  %v1775_v39 = vpop.eup %1774 }
 0x349   : >> { %1784 = vpow2.f32 %v1070_v15  ;;  %v994_v12 = vsub.f32 %v2413_v1, %v908_v58  ;;  %v995_v30 = vsub.f32 %v2415_v2, %v908_v58 }
 0x34a   : >> { %1786 = vpow2.f32 %v1072_v57 }
 0x34b   : >> { %v1777_v61 = vpop.eup %1776  ;;  %v1074_v62 = vmul.f32 1.442695, %v994_v12  ;;  %v1076_v52 = vmul.f32 1.442695, %v995_v30 }
 0x34c   : >> { %v1779_v3 = vpop.eup %1778  ;;  %v911_v53 = vpop.xlane.xlu1 %910  ;;  %v1585_v40 = vpack.c.bf16 %v1777_v61, %v1773_v59 }
 0x34d   : >> { %v996_v41 = vsub.f32 %v2419_v4, %v911_v53  ;;  %v997_v48 = vsub.f32 %v2421_v5, %v911_v53  ;;  %v1583_v21 = vpack.c.bf16 %v1779_v3, %v1775_v39  ;;  %1788 = vpow2.f32 %v1074_v62 }
 0x34e   : >> { %1790 = vpow2.f32 %v1076_v52 }
 0x34f   : >> { %v1078_v55 = vmul.f32 1.442695, %v996_v41  ;;  %v1080_v56 = vmul.f32 1.442695, %v997_v48  ;;  %1584 = vmatprep.subr.bf16.mxu0 %v1583_v21  ;;  %1645 = vmatprep.subr.bf16.mxu1 %v1583_v21  ;;  %v1781_v2 = vpop.eup %1780 }
 0x350   : >> { %1586 = vmatpush1.bf16.xpose.msra.mxu0 %v1585_v40  ;;  %1661 = vmatpush1.bf16.xpose.msra.mxu1 %v1585_v40  ;;  %v914_v1 = vpop.xlane.xlu1 %913  ;;  %v1783_v24 = vpop.eup %1782 }
 0x351   : >> { %1792 = vpow2.f32 %v1078_v55  ;;  %v998_v43 = vsub.f32 %v2425_v7, %v914_v1  ;;  %v999_v44 = vsub.f32 %v2427_v8, %v914_v1 }
 0x352   : >> { %1794 = vpow2.f32 %v1080_v56 }
 0x353   : >> { %v1785_v4 = vpop.eup %1784  ;;  %v1082_v5 = vmul.f32 1.442695, %v998_v43  ;;  %v1084_v27 = vmul.f32 1.442695, %v999_v44 }
 0x354   : >> { %v1787_v18 = vpop.eup %1786  ;;  %v917_v36 = vpop.xlane.xlu1 %916  ;;  %v1589_v46 = vpack.c.bf16 %v1785_v4, %v1781_v2 }
 0x355   : >> { %v1000_v0 = vsub.f32 %v2431_v10, %v917_v36  ;;  %v1001_v49 = vsub.f32 %v2433_v11, %v917_v36  ;;  %v1587_v50 = vpack.c.bf16 %v1787_v18, %v1783_v24  ;;  %1796 = vpow2.f32 %v1082_v5 }
 0x356   : >> { %1798 = vpow2.f32 %v1084_v27 }
 0x357   : >> { %v1086_v15 = vmul.f32 1.442695, %v1000_v0  ;;  %v1088_v57 = vmul.f32 1.442695, %v1001_v49  ;;  %1588 = vmatprep.subr.bf16.mxu0 %v1587_v50  ;;  %1646 = vmatprep.subr.bf16.mxu1 %v1587_v50  ;;  %v1789_v8 = vpop.eup %1788 }
 0x358   : >> { %1590 = vmatpush1.bf16.xpose.msra.mxu0 %v1589_v46  ;;  %1662 = vmatpush1.bf16.xpose.msra.mxu1 %v1589_v46  ;;  %v920_v7 = vpop.xlane.xlu1 %919  ;;  %v1791_v12 = vpop.eup %1790 }
 0x359   : >> { %1800 = vpow2.f32 %v1086_v15  ;;  %v1002_v58 = vsub.f32 %v2437_v13, %v920_v7  ;;  %v1003_v59 = vsub.f32 %v2439_v14, %v920_v7 }
 0x35a   : >> { %1802 = vpow2.f32 %v1088_v57 }
 0x35b   : >> { %v1793_v10 = vpop.eup %1792  ;;  %v1090_v11 = vmul.f32 1.442695, %v1002_v58  ;;  %v1092_v39 = vmul.f32 1.442695, %v1003_v59 }
 0x35c   : >> { %v1795_v30 = vpop.eup %1794  ;;  %v923_v61 = vpop.xlane.xlu1 %922  ;;  %v1593_v62 = vpack.c.bf16 %v1793_v10, %v1789_v8 }
 0x35d   : >> { %v1004_v3 = vsub.f32 %v2443_v16, %v923_v61  ;;  %v1005_v52 = vsub.f32 %v2445_v17, %v923_v61  ;;  %v1591_v53 = vpack.c.bf16 %v1795_v30, %v1791_v12  ;;  %1804 = vpow2.f32 %v1090_v11 }
 0x35e   : >> { %1806 = vpow2.f32 %v1092_v39 }
 0x35f   : >> { %v1094_v40 = vmul.f32 1.442695, %v1004_v3  ;;  %v1096_v41 = vmul.f32 1.442695, %v1005_v52  ;;  %1592 = vmatprep.subr.bf16.mxu0 %v1591_v53  ;;  %1647 = vmatprep.subr.bf16.mxu1 %v1591_v53  ;;  %v1797_v14 = vpop.eup %1796 }
 0x360   : >> { %1594 = vmatpush1.bf16.xpose.msra.mxu0 %v1593_v62  ;;  %1663 = vmatpush1.bf16.xpose.msra.mxu1 %v1593_v62  ;;  %v926_v13 = vpop.xlane.xlu1 %925  ;;  %v1799_v55 = vpop.eup %1798 }
 0x361   : >> { %1808 = vpow2.f32 %v1094_v40  ;;  %v1006_v48 = vsub.f32 %v2449_v19, %v926_v13  ;;  %v1007_v21 = vsub.f32 %v2451_v20, %v926_v13 }
 0x362   : >> { %1810 = vpow2.f32 %v1096_v41 }
 0x363   : >> { %v1801_v16 = vpop.eup %1800  ;;  %v1098_v17 = vmul.f32 1.442695, %v1006_v48  ;;  %v1100_v1 = vmul.f32 1.442695, %v1007_v21 }
 0x364   : >> { %v1803_v56 = vpop.eup %1802  ;;  %v929_v2 = vpop.xlane.xlu1 %928  ;;  %v1597_v43 = vpack.c.bf16 %v1801_v16, %v1797_v14 }
 0x365   : >> { %v1008_v44 = vsub.f32 %v2455_v22, %v929_v2  ;;  %v1009_v24 = vsub.f32 %v2457_v23, %v929_v2  ;;  %v1595_v4 = vpack.c.bf16 %v1803_v56, %v1799_v55  ;;  %1812 = vpow2.f32 %v1098_v17 }
 0x366   : >> { %1814 = vpow2.f32 %v1100_v1 }
 0x367   : >> { %v1102_v5 = vmul.f32 1.442695, %v1008_v44  ;;  %v1104_v18 = vmul.f32 1.442695, %v1009_v24  ;;  %1596 = vmatprep.subr.bf16.mxu0 %v1595_v4  ;;  %1648 = vmatprep.subr.bf16.mxu1 %v1595_v4  ;;  %v1805_v20 = vpop.eup %1804 }
 0x368   : >> { %1598 = vmatpush1.bf16.xpose.msra.mxu0 %v1597_v43  ;;  %1664 = vmatpush1.bf16.xpose.msra.mxu1 %v1597_v43  ;;  %v932_v19 = vpop.xlane.xlu1 %931  ;;  %v1807_v46 = vpop.eup %1806 }
 0x369   : >> { %1816 = vpow2.f32 %v1102_v5  ;;  %v1010_v27 = vsub.f32 %v2461_v25, %v932_v19  ;;  %v1011_v36 = vsub.f32 %v2463_v26, %v932_v19 }
 0x36a   : >> { %1818 = vpow2.f32 %v1104_v18 }
 0x36b   : >> { %v1809_v22 = vpop.eup %1808  ;;  %v1106_v23 = vmul.f32 1.442695, %v1010_v27  ;;  %v1108_v49 = vmul.f32 1.442695, %v1011_v36 }
 0x36c   : >> { %v1811_v0 = vpop.eup %1810  ;;  %v935_v50 = vpop.xlane.xlu0 %934  ;;  %v1601_v15 = vpack.c.bf16 %v1809_v22, %v1805_v20 }
 0x36d   : >> { %v1012_v57 = vsub.f32 %v2467_v28, %v935_v50  ;;  %v1013_v7 = vsub.f32 %v2469_v29, %v935_v50  ;;  %v1599_v8 = vpack.c.bf16 %v1811_v0, %v1807_v46  ;;  %1820 = vpow2.f32 %v1106_v23 }
 0x36e   : >> { %1822 = vpow2.f32 %v1108_v49 }
 0x36f   : >> { %v1110_v58 = vmul.f32 1.442695, %v1012_v57  ;;  %v1112_v59 = vmul.f32 1.442695, %v1013_v7  ;;  %1600 = vmatprep.subr.bf16.mxu0 %v1599_v8  ;;  %1649 = vmatprep.subr.bf16.mxu1 %v1599_v8  ;;  %v1813_v26 = vpop.eup %1812 }
 0x370   : >> { %1602 = vmatpush1.bf16.xpose.msra.mxu0 %v1601_v15  ;;  %1665 = vmatpush1.bf16.xpose.msra.mxu1 %v1601_v15  ;;  %v938_v25 = vpop.xlane.xlu1 %937  ;;  %v1815_v11 = vpop.eup %1814 }
 0x371   : >> { %1824 = vpow2.f32 %v1110_v58  ;;  %v1014_v12 = vsub.f32 %v2473_v31, %v938_v25  ;;  %v1015_v10 = vsub.f32 %v2475_v32, %v938_v25 }
 0x372   : >> { %1826 = vpow2.f32 %v1112_v59  ;;  %v2748_v59 = vld [vmem:[#allocation14_spill] sm:$0xff] }
 0x373   : >> { %v1817_v28 = vpop.eup %1816  ;;  %v1114_v29 = vmul.f32 1.442695, %v1014_v12  ;;  %v1116_v39 = vmul.f32 1.442695, %v1015_v10 }
 0x374   : >> { %v1819_v30 = vpop.eup %1818  ;;  %v941_v61 = vpop.xlane.xlu1 %940  ;;  %v1605_v62 = vpack.c.bf16 %v1817_v28, %v1813_v26  ;;  %v2749_v26 = vld [vmem:[#allocation15_spill] sm:$0xff] }
 0x375   : >> { %v1016_v3 = vsub.f32 %v2479_v34, %v941_v61  ;;  %v1017_v52 = vsub.f32 %v2481_v35, %v941_v61  ;;  %v1603_v53 = vpack.c.bf16 %v1819_v30, %v1815_v11  ;;  %1828 = vpow2.f32 %v1114_v29  ;;  %v2750_v29 = vld [vmem:[#allocation16_spill] sm:$0xff] }
 0x376   : >> { %1830 = vpow2.f32 %v1116_v39  ;;  %v2751_v39 = vld [vmem:[#allocation17_spill] sm:$0xff] }
 0x377   : >> { %v1118_v40 = vmul.f32 1.442695, %v1016_v3  ;;  %v1120_v41 = vmul.f32 1.442695, %v1017_v52  ;;  %1604 = vmatprep.subr.bf16.mxu0 %v1603_v53  ;;  %1650 = vmatprep.subr.bf16.mxu1 %v1603_v53  ;;  %v1821_v32 = vpop.eup %1820 }
 0x378   : >> { %1606 = vmatpush1.bf16.xpose.msra.mxu0 %v1605_v62  ;;  %1666 = vmatpush1.bf16.xpose.msra.mxu1 %v1605_v62  ;;  %v944_v31 = vpop.xlane.xlu1 %943  ;;  %v1823_v48 = vpop.eup %1822 }
 0x379   : >> { %1832 = vpow2.f32 %v1118_v40  ;;  %v1018_v13 = vsub.f32 %v2485_v37, %v944_v31  ;;  %v1019_v14 = vsub.f32 %v2487_v38, %v944_v31 }
 0x37a   : >> { %1834 = vpow2.f32 %v1120_v41 }
 0x37b   : >> { %v1825_v34 = vpop.eup %1824  ;;  %v1122_v35 = vmul.f32 1.442695, %v1018_v13  ;;  %v1124_v55 = vmul.f32 1.442695, %v1019_v14  ;;  %v2753_v14 = vld [vmem:[#allocation19_spill] sm:$0xff] }
 0x37c   : >> { %v1827_v21 = vpop.eup %1826  ;;  %v947_v16 = vpop.xlane.xlu1 %946  ;;  %v1609_v17 = vpack.c.bf16 %v1825_v34, %v1821_v32  ;;  %v2752_v32 = vld [vmem:[#allocation18_spill] sm:$0xff] }
 0x37d   : >> { %v1020_v56 = vsub.f32 %v2491_v42, %v947_v16  ;;  %v1021_v1 = vsub.f32 %v2493_v45, %v947_v16  ;;  %v1607_v2 = vpack.c.bf16 %v1827_v21, %v1823_v48  ;;  %1836 = vpow2.f32 %v1122_v35 }
 0x37e   : >> { %1838 = vpow2.f32 %v1124_v55 }
 0x37f   : >> { %v1126_v43 = vmul.f32 1.442695, %v1020_v56  ;;  %v1128_v44 = vmul.f32 1.442695, %v1021_v1  ;;  %1608 = vmatprep.subr.bf16.mxu0 %v1607_v2  ;;  %1651 = vmatprep.subr.bf16.mxu1 %v1607_v2  ;;  %v1829_v38 = vpop.eup %1828  ;;  %v2755_v1 = vld [vmem:[#allocation21_spill] sm:$0xff] }
 0x380   : >> { %1610 = vmatpush1.bf16.xpose.msra.mxu0 %v1609_v17  ;;  %1667 = vmatpush1.bf16.xpose.msra.mxu1 %v1609_v17  ;;  %v950_v37 = vpop.xlane.xlu1 %949  ;;  %v1831_v5 = vpop.eup %1830  ;;  %v2754_v17 = vld [vmem:[#allocation20_spill] sm:$0xff] }
 0x381   : >> { %1840 = vpow2.f32 %v1126_v43  ;;  %v1022_v24 = vsub.f32 %v2497_v51, %v950_v37  ;;  %v1023_v4 = vsub.f32 %v2499_v54, %v950_v37 }
 0x382   : >> { %1842 = vpow2.f32 %v1128_v44 }
 0x383   : >> { %v1833_v42 = vpop.eup %1832  ;;  %v1130_v45 = vmul.f32 1.442695, %v1022_v24  ;;  %v1132_v19 = vmul.f32 1.442695, %v1023_v4 }
 0x384   : >> { %v1835_v18 = vpop.eup %1834  ;;  %v953_v20 = vpop.xlane.xlu1 %952  ;;  %v1613_v27 = vpack.c.bf16 %v1833_v42, %v1829_v38  ;;  %v2756_v42 = vld [vmem:[#allocation22_spill] sm:$0xff] }
 0x385   : >> { %v1024_v36 = vsub.f32 %v2503_v60, %v953_v20  ;;  %v1025_v46 = vsub.f32 %v2505_v63, %v953_v20  ;;  %v1611_v22 = vpack.c.bf16 %v1835_v18, %v1831_v5  ;;  %1844 = vpow2.f32 %v1130_v45  ;;  %v2757_v18 = vld [vmem:[#allocation23_spill] sm:$0xff] }
 0x386   : >> { %1846 = vpow2.f32 %v1132_v19 }
 0x387   : >> { %v1134_v23 = vmul.f32 1.442695, %v1024_v36  ;;  %v1136_v0 = vmul.f32 1.442695, %v1025_v46  ;;  %1612 = vmatprep.subr.bf16.mxu0 %v1611_v22  ;;  %1652 = vmatprep.subr.bf16.mxu1 %v1611_v22  ;;  %v1837_v54 = vpop.eup %1836 }
 0x388   : >> { %1614 = vmatpush1.bf16.xpose.msra.mxu0 %v1613_v27  ;;  %1668 = vmatpush1.bf16.xpose.msra.mxu1 %v1613_v27  ;;  %v956_v51 = vpop.xlane.xlu1 %955  ;;  %v1839_v15 = vpop.eup %1838 }
 0x389   : >> { %1848 = vpow2.f32 %v1134_v23  ;;  %v1026_v49 = vsub.f32 %v2509_v6, %v956_v51  ;;  %v1027_v50 = vsub.f32 %v2511_v9, %v956_v51  ;;  %v2758_v23 = vld [vmem:[#allocation24_spill] sm:$0xff]  ;;  %v2759_v51 = vld [vmem:[#allocation25_spill] sm:$0xff] }
 0x38a   : >> { %1850 = vpow2.f32 %v1136_v0 }
 0x38b   : >> { %v1841_v60 = vpop.eup %1840  ;;  %v1138_v63 = vmul.f32 1.442695, %v1026_v49  ;;  %v1140_v7 = vmul.f32 1.442695, %v1027_v50 }
 0x38c   : >> { %v1843_v57 = vpop.eup %1842  ;;  %v959_v8 = vpop.xlane.xlu1 %958  ;;  %v1617_v58 = vpack.c.bf16 %v1841_v60, %v1837_v54 }
 0x38d   : >> { %v1028_v25 = vsub.f32 %v2748_v59, %v959_v8  ;;  %v1029_v12 = vsub.f32 %v2749_v26, %v959_v8  ;;  %v1615_v10 = vpack.c.bf16 %v1843_v57, %v1839_v15  ;;  %1852 = vpow2.f32 %v1138_v63 }
 0x38e   : >> { %1854 = vpow2.f32 %v1140_v7 }
 0x38f   : >> { %v1142_v11 = vmul.f32 1.442695, %v1028_v25  ;;  %v1144_v28 = vmul.f32 1.442695, %v1029_v12  ;;  %1616 = vmatprep.subr.bf16.mxu0 %v1615_v10  ;;  %1653 = vmatprep.subr.bf16.mxu1 %v1615_v10  ;;  %v1845_v9 = vpop.eup %1844 }
 0x390   : >> { %1618 = vmatpush1.bf16.xpose.msra.mxu0 %v1617_v58  ;;  %1669 = vmatpush1.bf16.xpose.msra.mxu1 %v1617_v58  ;;  %v962_v6 = vpop.xlane.xlu1 %961  ;;  %v1847_v62 = vpop.eup %1846  ;;  %v2760_v58 = vld [vmem:[#allocation26_spill] sm:$0xff] }
 0x391   : >> { %1856 = vpow2.f32 %v1142_v11  ;;  %v1030_v30 = vsub.f32 %v2750_v29, %v962_v6  ;;  %v1031_v61 = vsub.f32 %v2751_v39, %v962_v6 }
 0x392   : >> { %1858 = vpow2.f32 %v1144_v28 }
 0x393   : >> { %v1849_v3 = vpop.eup %1848  ;;  %v1146_v52 = vmul.f32 1.442695, %v1030_v30  ;;  %v1148_v40 = vmul.f32 1.442695, %v1031_v61 }
 0x394   : >> { %v1851_v53 = vpop.eup %1850  ;;  %v965_v41 = vpop.xlane.xlu1 %964  ;;  %v1621_v31 = vpack.c.bf16 %v1849_v3, %v1845_v9 }
 0x395   : >> { %v1032_v13 = vsub.f32 %v2752_v32, %v965_v41  ;;  %v1033_v48 = vsub.f32 %v2753_v14, %v965_v41  ;;  %v1619_v34 = vpack.c.bf16 %v1851_v53, %v1847_v62  ;;  %1860 = vpow2.f32 %v1146_v52  ;;  %v462_v52 = vld [vmem:[%s2572_s16] sm:$0xff]  ;;  %s1955_s16 = scalar_lea.vmem (%p364_p3), %s1954_s8, 256 }
 0x396   : >> { %1862 = vpow2.f32 %v1148_v40  ;;  %v1249_v41 = vlaneseq  ;;  %p1957_p11 = scmp.lt.s32.totalorder (%p364_p3), %s1955_s16, %s1949_s7 }
 0x397   : >> { %v1150_v35 = vmul.f32 1.442695, %v1032_v13  ;;  %v1152_v21 = vmul.f32 1.442695, %v1033_v48  ;;  %1620 = vmatprep.subr.bf16.mxu0 %v1619_v34  ;;  %1654 = vmatprep.subr.bf16.mxu1 %v1619_v34  ;;  %v1853_v16 = vpop.eup %1852 }
 0x398   : >> { %1622 = vmatpush1.bf16.xpose.msra.mxu0 %v1621_v31  ;;  %1670 = vmatpush1.bf16.xpose.msra.mxu1 %v1621_v31  ;;  %v968_v55 = vpop.xlane.xlu1 %967  ;;  %v1855_v43 = vpop.eup %1854  ;;  %v1250_v13 = vshrl.u32 %v1249_v41, 7  ;;  %p1958_p1 = por (%p364_p3), %p1957_p11, %p1956_p9 }
 0x399   : >> { %1864 = vpow2.f32 %v1150_v35  ;;  %v1034_v56 = vsub.f32 %v2754_v17, %v968_v55  ;;  %v1035_v2 = vsub.f32 %v2755_v1, %v968_v55 }
 0x39a   : >> { %1866 = vpow2.f32 %v1152_v21  ;;  %v1251_v14 = vsub.s32 0, %v1250_v13  ;;  %p1959_p6 = pnand (%p364_p3), %p1958_p1, %p1952_p10 }
 0x39b   : >> { %v1857_v44 = vpop.eup %1856  ;;  %v1154_v37 = vmul.f32 1.442695, %v1034_v56  ;;  %v1156_v24 = vmul.f32 1.442695, %v1035_v2 }
 0x39c   : >> { %v1859_v38 = vpop.eup %1858  ;;  %v971_v4 = vpop.xlane.xlu1 %970  ;;  %v1625_v5 = vpack.c.bf16 %v1857_v44, %v1853_v16  ;;  %v2052_v44 = vmov (%p364_p3), 0  }
 0x39d   : >> { %v1036_v45 = vsub.f32 %v2756_v42, %v971_v4  ;;  %v1037_v19 = vsub.f32 %v2757_v18, %v971_v4  ;;  %v1623_v20 = vpack.c.bf16 %v1859_v38, %v1855_v43  ;;  %1868 = vpow2.f32 %v1154_v37  ;;  %1888 = vset.pattern.permute.xlu0 (%p364_p3), %v2052_v44  ;;  %v1268_v37 = vld [vmem:[%s2699_s5] sm:$0xf] (%p364_p3) }
 0x39e   : >> { %1870 = vpow2.f32 %v1156_v24  ;;  %v2051_v43 = vmov (%p364_p3), 0.0   ;;  %1271 = vperm.xlu0 (%p364_p3), %1888, %v1268_v37   ;;  %v1263_v24 = vld [vmem:[%s2698_s4] sm:$0xf] (%p364_p3) }
 0x39f   : >> { %v1158_v27 = vmul.f32 1.442695, %v1036_v45  ;;  %v1160_v36 = vmul.f32 1.442695, %v1037_v19  ;;  %1624 = vmatprep.subr.bf16.mxu0 %v1623_v20  ;;  %1655 = vmatprep.subr.bf16.mxu1 %v1623_v20  ;;  %v1861_v22 = vpop.eup %1860 }
 0x3a0   : >> { %1626 = vmatpush1.bf16.xpose.msra.mxu0 %v1625_v5  ;;  %1671 = vmatpush1.bf16.xpose.msra.mxu1 %v1625_v5  ;;  %v974_v46 = vpop.xlane.xlu1 %973  ;;  %v1863_v49 = vpop.eup %1862 }
 0x3a1   : >> { %1872 = vpow2.f32 %v1158_v27  ;;  %v1038_v0 = vsub.f32 %v2758_v23, %v974_v46  ;;  %v1039_v54 = vsub.f32 %v2759_v51, %v974_v46 }
 0x3a2   : >> { %1874 = vpow2.f32 %v1160_v36 }
 0x3a3   : >> { %v1865_v50 = vpop.eup %1864  ;;  %v1162_v15 = vmul.f32 1.442695, %v1038_v0  ;;  %v1164_v63 = vmul.f32 1.442695, %v1039_v54 }
 0x3a4   : >> { %v1867_v60 = vpop.eup %1866  ;;  %v977_v57 = vpop.xlane.xlu1 %976  ;;  %v1629_v7 = vpack.c.bf16 %v1865_v50, %v1861_v22 }
 0x3a5   : >> { %v1040_v8 = vsub.f32 %v2551_v33, %v977_v57  ;;  %v1041_v59 = vsub.f32 %v2760_v58, %v977_v57  ;;  %v1627_v25 = vpack.c.bf16 %v1867_v60, %v1863_v49  ;;  %1876 = vpow2.f32 %v1162_v15 }
 0x3a6   : >> { %1878 = vpow2.f32 %v1164_v63 }
 0x3a7   : >> { %v1166_v26 = vmul.f32 1.442695, %v1040_v8  ;;  %v1168_v12 = vmul.f32 1.442695, %v1041_v59  ;;  %1628 = vmatprep.subr.bf16.mxu0 %v1627_v25  ;;  %1656 = vmatprep.subr.bf16.mxu1 %v1627_v25  ;;  %v1869_v10 = vpop.eup %1868 }
 0x3a8   : >> { %1630 = vmatpush1.bf16.xpose.msra.mxu0 %v1629_v7  ;;  %1672 = vmatpush1.bf16.xpose.msra.mxu1 %v1629_v7  ;;  %v1871_v11 = vpop.eup %1870 }
 0x3a9   : >> { %1880 = vpow2.f32 %v1166_v26 }
 0x3aa   : >> { %1882 = vpow2.f32 %v1168_v12 }
 0x3ab   : >> { %v1873_v28 = vpop.eup %1872 }
 0x3ac   : >> { %v1875_v6 = vpop.eup %1874  ;;  %v1633_v9 = vpack.c.bf16 %v1873_v28, %v1869_v10 }
 0x3ad   : >> { %v1631_v33 = vpack.c.bf16 %v1875_v6, %v1871_v11 }
 0x3af   : >> { %1632 = vmatprep.subr.bf16.mxu0 %v1631_v33  ;;  %1657 = vmatprep.subr.bf16.mxu1 %v1631_v33  ;;  %v1877_v29 = vpop.eup %1876 }
 0x3b0   : >> { %1634 = vmatpush1.bf16.xpose.msra.mxu0 %v1633_v9  ;;  %1673 = vmatpush1.bf16.xpose.msra.mxu1 %v1633_v9  ;;  %v1879_v30 = vpop.eup %1878 }
 0x3b3   : >> { %v1881_v39 = vpop.eup %1880 }
 0x3b4   : >> { %v1883_v61 = vpop.eup %1882  ;;  %v1637_v62 = vpack.c.bf16 %v1881_v39, %v1877_v29 }
 0x3b5   : >> { %v1635_v3 = vpack.c.bf16 %v1883_v61, %v1879_v30 }
 0x3b7   : >> { %1636 = vmatprep.subr.bf16.mxu0 %v1635_v3  ;;  %1658 = vmatprep.subr.bf16.mxu1 %v1635_v3 }
 0x3b8   : >> { %1638 = vmatpush1.bf16.xpose.msra.mxu0 %v1637_v62  ;;  %1674 = vmatpush1.bf16.xpose.msra.mxu1 %v1637_v62 }
 0x3bf   : >> { %1241 = vmatmul.mubr.f32.vlgmr.msra.gmra.mrb[64].mxu1 %v2050_v47  ;;  %1235 = vmatmul.mubr.f32.vlgmr.msra.gmra.mrb[2].mxu0 %v462_v52 }
 0x3c0   : > { %1342 = vmatprep.mubr.f32.mxu0 (%p364_p3), %v2051_v43 }
 0x41d   : > { %v1272_v4 = vpop.permute.xlu0 (%p364_p3), %1271 }
 0x492   : >> { %v1242_v53 = vpop.f32.mrb[64].mxu1  ;;  %v1236_v40 = vpop.f32.mrb[2].mxu0 }
 0x493   : >> { %1884 = vrcp.f32 %v1242_v53  ;;  %v1244_v31 = vpop.f32.mrb[65].mxu1  ;;  %v1238_v32 = vpop.f32.mrb[3].mxu0 }
 0x494   : >> { %1886 = vrcp.f32 %v1244_v31 }
 0x49d   : >> { %v1885_v48 = vpop.eup %1884  ;;  %366 = sbr.rel (!%p364_p3) target bundleno = 100 (0x64), region = 116 }
 0x49e   : >> { %v1887_v34 = vpop.eup %1886  ;;  %v1252_v35 = vrot.slane %v1885_v48, %v1251_v14 }
 0x49f   : >> { %v1256_v21 = vrot.slane %v1887_v34, %v1251_v14 }
 0x4a0   : >> { %v1257_v55 = vmul.f32 %v1252_v35, %v1236_v40 }
 0x4a1   : >> { %v1258_v16 = vmul.f32 %v1256_v21, %v1238_v32 }
 0x4a2   : >> { %1261 = vst [vmem:[%s1260_s18] sm:$0xff] %v1257_v55 }
 0x4a3   : >> { %1262 = vst [vmem:[%s1260_s18 + $0x8] sm:$0xff] %v1258_v16 }
 0x4aa   : > { %v1265_v47 = vld [vmem:[#allocation2 + $0x8] sm:$0xff]  ;;  %v1267_v17 = vld [vmem:[#allocation2 + $0x18] sm:$0xff]  ;;  %v1264_v56 = vld [vmem:[#allocation2] sm:$0xff] }
 0x4ab   : > { %v1639_v1 = vpack.c.bf16 %v1267_v17, %v1265_v47  ;;  %v1266_v2 = vld [vmem:[#allocation2 + $0x10] sm:$0xff] }
 0x4ac   : > { %v1641_v38 = vpack.c.bf16 %v1266_v2, %v1264_v56 }
 0x4ad   : > { %1640 = vmatprep.subr.bf16.mxu0 %v1639_v1 }
 0x4ae   : > { %1642 = vmatpush1.bf16.msra.mxu0 %v1641_v38 }
 0x4b1   : > { %1562 = vmatmul.mubr.msk.f32.vlgmr.msra.gmra.mrb[0].mxu0 %vm1274_vm3, %v1263_v24 }
 0x584   : > { %v1344_v5 = vpop.f32.mrb[0].mxu0 }
 0x585   : > { %v1345_v42 = vadd.f32 %v1344_v5, %v1272_v4  ;;  %v1346_v45 = vpop.f32.mrb[1].mxu0 }
 0x586   : > { %v1347_v18 = vadd.f32 %v1346_v45, %v1272_v4 }
 0x588   : > { %v1351_v19 = vcombine.low %v1345_v42, %v1347_v18 }
 0x58a   : > { %1353 = vst [vmem:[%s2282_s15] sm:$0xff] %v1351_v19 }
 0x58b   : > { %1962 = shalt.err (!%p1959_p6)
}
 0x58c   : > { %s1963_s28 = scalar_lea.hbm %s2644_s19, 128  ;;  %s1967_s1 = scalar_lea.hbm %s2700_s6, 256 }
 0x58d   : > { %p1964_p2 = scmp.ne.s32.totalorder %s2644_s19, %s1963_s28  ;;  %p1968_p8 = scmp.lt.u32.totalorder %s2644_s19, %s2700_s6 }
 0x58e   : > { %p1969_p0 = scmp.lt.u32.totalorder %s1967_s1, %s1963_s28  ;;  %p1971_p12 = scmp.lt.u32.totalorder %s1963_s28, %s2644_s19 }
 0x58f   : > { %p1965_p5 = pnand %p1964_p2, %p2761_p13 }
 0x590   : > { %p1970_p3 = por %p1969_p0, %p1968_p8 }
 0x591   : > { %p1966_p4 = pneg %p1965_p5 }
 0x592   : > { %p1972_p7 = por %p1971_p12, %p1970_p3 }
 0x594   : > { %p1973_p10 = pnand %p1972_p7, %p1966_p4 }
 0x596   : > { %1976 = shalt.err (!%p1973_p10)
}
 0x597   : > { %1679 = dma.vmem_to_hbm [thread:$0]  (%p2761_p13), %s2646_s9, 128, %s2644_s19, %s1355_s29  }
 0x598 PF: > { %s1383_s13 = sand.u32 1, %s2019_s21   ;;  %p2762_p9 = scmp.ne.s32.totalorder %s2725_s12, 0 }
 0x599   : > { %p2763_p11 = scmp.ge.s32.totalorder %s2039_s26, 2  ;;  %s1384_s30 = scalar_lea.sflag [#allocation5], %s1383_s13 }
 0x59b   : > { %p1689_p1 = pnand %p2763_p11, %p2762_p9 }
 0x59d   : > { %2014 = dma.done.wait (!%p1689_p1), %s1384_s30, 128  }
 0x59e   : > { %2016 = vsyncadd (!%p1689_p1), %s1384_s30, 4294967168  ;;  %s25_s26 = sadd.s32 1, %s2039_s26   ;;  %s2764_s10 = sld [smem:[#allocation12_spill]] }
 0x59f   : > { %p22_p6 = scmp.ge.s32.totalorder %s25_s26, 4   ;;  %s2765_s21 = smov %s2023_s22 }
 0x5a0   : > { %s2766_s22 = smov %s2027_s23  ;;  %s2767_s23 = smov %s2145_s11 }
 0x5a1   : > { %s2768_s24 = smov %s2035_s25  ;;  %24 = sbr.rel (!%p22_p6) target bundleno = 10 (0xa), region = 127 }
 0x5a4   : > { %s2769_s25 = smov %s2764_s10 }
 0x5a8   :  { %1389 = vsyncpa [#allocation4], 1 }
 0x5a9   :  { %1391 = vsyncpa [#allocation4 + $0x1], 1 }
 0x5aa   :  { %1392 = vsyncpa [#allocation7], 1 }
 0x5ab   :  { %1394 = vsyncpa [#allocation7 + $0x1], 1 }
 0x5ac   :  { %1395 = vsyncpa [#allocation5], 1 }
 0x5ad   :  { %1397 = vsyncpa [#allocation5 + $0x1], 1 }

</bundles_post_ra>
